<compile_context>
chip_gen: v5e
topology: v5e:2x2
jax: 0.10.0
libtpu: 0.0.40
codegen_flags: <defaults>
</compile_context>

<pallas_src>
import functools

import jax
import jax.numpy as jnp
from jax.experimental import pallas as pl
from jax.experimental.pallas import tpu as pltpu


def _it_att_block_kernel(x_ref, mem_ref, wq_ref, wk_ref, wv_ref, wp_ref,
                         bp_ref, gamma_ref, beta_ref, o_ref, *,
                         eps, compute_dtype, approx_recip):
    f32 = jnp.float32
    Bb, N, C = x_ref.shape
    M = mem_ref.shape[1]
    H, hd, _ = wq_ref.shape            # per-head weights: (H, hd, C)
    G = H * Bb                          # flattened head*batch group dim, g = h*Bb + b

    # dot_general dimension numbers for (G, a, K) x (G, ?, ?) -> (G, a, b); one batch dim.
    DN_NT = (((2,), (2,)), ((0,), (0,)))   # contract last dim of both operands ("transposed" rhs)
    DN_NN = (((2,), (1,)), ((0,), (0,)))   # contract lhs last dim with rhs middle dim

    # ---- activations: cast once to the MXU operand dtype (softmax / LN stay f32) ----
    xc = x_ref[...].astype(compute_dtype)     # (Bb, N, C)
    mc = mem_ref[...].astype(compute_dtype)   # (Bb, M, C)

    # Replicate activations over heads (and weights over the batch block) so every matmul is one
    # (head*batch)-batched dot_general.  Only leading-dim broadcasts + leading-dim reshapes are
    # used — no transposes, no sublane/lane repacks.
    xg = jnp.broadcast_to(xc[None], (H, Bb, N, C)).reshape(G, N, C)
    mg = jnp.broadcast_to(mc[None], (H, Bb, M, C)).reshape(G, M, C)

    def rep_w(w):  # (H, k1, k2) -> (G, k1, k2); identity when Bb == 1 (the default block size)
        if Bb == 1:
            return w
        return jnp.broadcast_to(w[:, None], (H, Bb) + w.shape[1:]).reshape((G,) + w.shape[1:])

    wq = rep_w(wq_ref[...])   # (G, hd, C), head_dim**-0.5 already folded in (wrapper)
    wk = rep_w(wk_ref[...])   # (G, hd, C)
    wv = rep_w(wv_ref[...])   # (G, hd, C)
    wp = rep_w(wp_ref[...])   # (G, hd, C)

    # ---- per-head projections (MXU accumulates f32 internally; result written in operand dtype) ----
    q = jax.lax.dot_general(xg, wq, DN_NT, preferred_element_type=compute_dtype)  # (G, N, hd)
    k = jax.lax.dot_general(mg, wk, DN_NT, preferred_element_type=compute_dtype)  # (G, M, hd)
    v = jax.lax.dot_general(mg, wv, DN_NT, preferred_element_type=compute_dtype)  # (G, M, hd)

    # ---- scaled dot-product attention, (head*batch)-batched, f32 softmax ----
    # TODO(synk): attn_mask / qk_norm paths not wired (module exercised with mask=None, qk_norm=False).
    s = jax.lax.dot_general(q, k, DN_NT, preferred_element_type=f32)              # (G, N, M)
    s = s - jnp.max(s, axis=-1, keepdims=True)
    p = jnp.exp(s)
    p = p * pl.reciprocal(jnp.sum(p, axis=-1, keepdims=True), approx=approx_recip)

    o = jax.lax.dot_general(p.astype(compute_dtype), v, DN_NN,
                            preferred_element_type=compute_dtype)                 # (G, N, hd)

    # ---- output projection per head, summed over heads (no head->channel relayout) ----
    yg = jax.lax.dot_general(o, wp, DN_NN, preferred_element_type=f32)            # (G, N, C)
    y = jnp.sum(yg.reshape(H, Bb, N, C), axis=0) + bp_ref[...].astype(f32)        # (Bb, N, C)

    # ---- single-pass LayerNorm over C (one sum + one sum-of-squares per token) ----
    inv_c = 1.0 / C
    s1 = jnp.sum(y, axis=-1, keepdims=True)
    s2 = jnp.sum(y * y, axis=-1, keepdims=True)
    mu = s1 * inv_c
    var = s2 * inv_c - mu * mu
    y_ln = ((y - mu) * jax.lax.rsqrt(var + eps) * gamma_ref[...].astype(f32)
            + beta_ref[...].astype(f32))

    # ---- residual: re-read x here so no f32 copy of x is live across the matmuls ----
    o_ref[...] = (x_ref[...].astype(f32) + y_ln).astype(o_ref.dtype)


def it_att_block(x, memory, params, *, num_heads, eps=1e-5,
                 compute_dtype=jnp.bfloat16, approx_recip=True,
                 block_b=None, vmem_limit_bytes=48 * 1024 * 1024,
                 single_buffer_weights=True):
    """x: (B, N, C), memory: (B, M, C) -> (B, N, C).

    params = (wq, wk, wv, wp, bp, gamma, beta) in math (in, out) layout
    (transpose nn.Linear.weight when porting from PyTorch).
    """
    B, N, C = x.shape
    _, M, _ = memory.shape
    wq, wk, wv, wp, bp, gamma, beta = params
    H = num_heads
    assert C % H == 0
    hd = C // H

    # ---- wrapper-side parameter plumbing (free XLA work, outside the kernel) ----
    scale = hd ** -0.5
    wq_h = ((wq.astype(jnp.float32) * scale)          # fold head_dim**-0.5 into Wq
            .reshape(C, H, hd).transpose(1, 2, 0).astype(compute_dtype))   # (H, hd, C)
    wk_h = wk.reshape(C, H, hd).transpose(1, 2, 0).astype(compute_dtype)   # (H, hd, C)
    wv_h = wv.reshape(C, H, hd).transpose(1, 2, 0).astype(compute_dtype)   # (H, hd, C)
    wp_h = wp.reshape(H, hd, C).astype(compute_dtype)                      # (H, hd, C)
    bp2 = bp.reshape(1, C).astype(jnp.float32)
    gamma2 = gamma.reshape(1, C).astype(jnp.float32)
    beta2 = beta.reshape(1, C).astype(jnp.float32)

    if block_b is None:
        # >= 2 grid steps so the "parallel" batch axis can shard across v7x's two TensorCores;
        # on v6e (single TC, 128 MiB VMEM) block_b can be raised towards B to amortize the
        # ~0.35 us per-grid-step overhead.  Larger block_b also replicates the (small) per-head
        # weights block_b times inside the kernel — keep it modest.
        block_b = 1 if B > 1 else B
    assert B % block_b == 0, "block_b must divide B"

    kernel = functools.partial(_it_att_block_kernel, eps=eps,
                               compute_dtype=compute_dtype, approx_recip=approx_recip)

    def build(buffered_weights):
        def const_spec(shape):
            zero = lambda g, _shape=shape: (0,) * len(_shape)
            if buffered_weights:
                # index_map is constant across the grid -> single-buffer the weights/LN params
                # (double buffering constants only wastes VMEM).
                return pl.BlockSpec(shape, zero, pipeline_mode=pl.Buffered(1))
            return pl.BlockSpec(shape, zero)

        grid_spec = pltpu.PrefetchScalarGridSpec(
            num_scalar_prefetch=0,
            grid=(B // block_b,),
            in_specs=[
                pl.BlockSpec((block_b, N, C), lambda g: (g, 0, 0)),   # x
                pl.BlockSpec((block_b, M, C), lambda g: (g, 0, 0)),   # memory
                const_spec((H, hd, C)),    # Wq (pre-scaled, per-head)
                const_spec((H, hd, C)),    # Wk (per-head)
                const_spec((H, hd, C)),    # Wv (per-head)
                const_spec((H, hd, C)),    # Wproj (per-head rows)
                const_spec((1, C)),        # proj bias
                const_spec((1, C)),        # LN gamma
                const_spec((1, C)),        # LN beta
            ],
            out_specs=pl.BlockSpec((block_b, N, C), lambda g: (g, 0, 0)),
        )
        return pl.pallas_call(
            kernel,
            out_shape=jax.ShapeDtypeStruct((B, N, C), x.dtype),
            grid_spec=grid_spec,
            compiler_params=pltpu.CompilerParams(
                dimension_semantics=("parallel",),
                vmem_limit_bytes=vmem_limit_bytes,
            ),
        )

    args = (x, memory, wq_h, wk_h, wv_h, wp_h, bp2, gamma2, beta2)
    if single_buffer_weights:
        try:
            return build(True)(*args)
        except Exception:
            # pl.Buffered(1) not supported by this jax/Mosaic build -> default double buffering.
            pass
    return build(False)(*args)


def _reference(x, memory, params, *, num_heads, eps=1e-5):
    wq, wk, wv, wp, bp, gamma, beta = params
    B, N, C = x.shape
    M = memory.shape[1]
    hd = C // num_heads
    q = (x @ wq).reshape(B, N, num_heads, hd).transpose(0, 2, 1, 3)
    k = (memory @ wk).reshape(B, M, num_heads, hd).transpose(0, 2, 1, 3)
    v = (memory @ wv).reshape(B, M, num_heads, hd).transpose(0, 2, 1, 3)
    s = jnp.einsum("bhnd,bhmd->bhnm", q, k) * (hd ** -0.5)
    p = jax.nn.softmax(s, axis=-1)
    o = jnp.einsum("bhnm,bhmd->bhnd", p, v).transpose(0, 2, 1, 3).reshape(B, N, C)
    y = o @ wp + bp
    mu = jnp.mean(y, axis=-1, keepdims=True)
    var = jnp.mean((y - mu) ** 2, axis=-1, keepdims=True)
    return x + ((y - mu) / jnp.sqrt(var + eps) * gamma + beta)


if __name__ == "__main__":
    B, N, M, C, num_heads = 2, 16, 8, 64, 4

    key = jax.random.PRNGKey(0)
    kx, km, k1, k2, k3, k4, k5, k6, k7 = jax.random.split(key, 9)

    x = jax.random.normal(kx, (B, N, C), dtype=jnp.float32)
    memory = jax.random.normal(km, (B, M, C), dtype=jnp.float32)

    wscale = 0.1
    wq = wscale * jax.random.normal(k1, (C, C), dtype=jnp.float32)
    wk = wscale * jax.random.normal(k2, (C, C), dtype=jnp.float32)
    wv = wscale * jax.random.normal(k3, (C, C), dtype=jnp.float32)
    wp = wscale * jax.random.normal(k4, (C, C), dtype=jnp.float32)
    bp = wscale * jax.random.normal(k5, (C,), dtype=jnp.float32)
    gamma = 1.0 + 0.1 * jax.random.normal(k6, (C,), dtype=jnp.float32)
    beta = 0.05 * jax.random.normal(k7, (C,), dtype=jnp.float32)
    params = (wq, wk, wv, wp, bp, gamma, beta)

    ref = _reference(x, memory, params, num_heads=num_heads)

    def rel_err(a, b):
        return float(jnp.linalg.norm(a - b) / jnp.linalg.norm(b))

    # f32-operand path with exact softmax reciprocal.  The tolerance covers XLA's default
    # reduced-precision f32 MXU matmuls differing between the kernel's per-head decomposition
    # and the reference's flat matmuls (with --jax_default_matmul_precision=highest the error
    # is ~1e-6).
    out_f32 = jax.block_until_ready(
        it_att_block(x, memory, params, num_heads=num_heads,
                     compute_dtype=jnp.float32, approx_recip=False))
    assert out_f32.shape == (B, N, C)
    assert rel_err(out_f32, ref) < 1e-2, f"f32 path rel err {rel_err(out_f32, ref)}"
    assert jnp.allclose(out_f32, ref, atol=5e-2, rtol=5e-2), "f32 path elementwise mismatch"

    # Default fast path: bf16 MXU operands (f32 accumulation) + approximate EUP reciprocal.
    out_bf16 = jax.block_until_ready(it_att_block(x, memory, params, num_heads=num_heads))
    assert out_bf16.shape == (B, N, C)
    assert rel_err(out_bf16, ref) < 3e-2, f"bf16 path rel err {rel_err(out_bf16, ref)}"

    print("KERNEL_OK")
</pallas_src>

<mosaic_0001>
module attributes {stable_mosaic.version = 11 : i64} {
  func.func @_it_att_block_kernel(%arg0: i32, %arg1: memref<1x16x64xf32, #tpu.memory_space<vmem>>, %arg2: memref<1x8x64xf32, #tpu.memory_space<vmem>>, %arg3: memref<4x16x64xf32, #tpu.memory_space<vmem>>, %arg4: memref<4x16x64xf32, #tpu.memory_space<vmem>>, %arg5: memref<4x16x64xf32, #tpu.memory_space<vmem>>, %arg6: memref<4x16x64xf32, #tpu.memory_space<vmem>>, %arg7: memref<1x64xf32, #tpu.memory_space<vmem>>, %arg8: memref<1x64xf32, #tpu.memory_space<vmem>>, %arg9: memref<1x64xf32, #tpu.memory_space<vmem>>, %arg10: memref<1x16x64xf32, #tpu.memory_space<vmem>>) attributes {dimension_semantics = [#tpu.dimension_semantics<parallel>], iteration_bounds = array<i64: 2>, scalar_prefetch = 0 : i64, scratch_operands = 0 : i64, tpu.core_type = #tpu.core_type<tc>, window_params = [{transform_indices = @transform_0, window_bounds = array<i64: 1, 16, 64>}, {transform_indices = @transform_1, window_bounds = array<i64: 1, 8, 64>}, {pipeline_mode = #tpu.pipeline_mode<synchronous>, transform_indices = @transform_2, window_bounds = array<i64: 4, 16, 64>}, {pipeline_mode = #tpu.pipeline_mode<synchronous>, transform_indices = @transform_3, window_bounds = array<i64: 4, 16, 64>}, {pipeline_mode = #tpu.pipeline_mode<synchronous>, transform_indices = @transform_4, window_bounds = array<i64: 4, 16, 64>}, {pipeline_mode = #tpu.pipeline_mode<synchronous>, transform_indices = @transform_5, window_bounds = array<i64: 4, 16, 64>}, {pipeline_mode = #tpu.pipeline_mode<synchronous>, transform_indices = @transform_6, window_bounds = array<i64: 1, 64>}, {pipeline_mode = #tpu.pipeline_mode<synchronous>, transform_indices = @transform_7, window_bounds = array<i64: 1, 64>}, {pipeline_mode = #tpu.pipeline_mode<synchronous>, transform_indices = @transform_8, window_bounds = array<i64: 1, 64>}, {transform_indices = @transform_9, window_bounds = array<i64: 1, 16, 64>}]} {
    %c0 = arith.constant 0 : index
    %c0_0 = arith.constant 0 : index
    %c0_1 = arith.constant 0 : index
    %0 = vector.load %arg1[%c0, %c0_0, %c0_1] : memref<1x16x64xf32, #tpu.memory_space<vmem>>, vector<1x16x64xf32>
    %c0_2 = arith.constant 0 : index
    %c0_3 = arith.constant 0 : index
    %c0_4 = arith.constant 0 : index
    %1 = vector.load %arg2[%c0_2, %c0_3, %c0_4] : memref<1x8x64xf32, #tpu.memory_space<vmem>>, vector<1x8x64xf32>
    %2 = vector.shape_cast %0 : vector<1x16x64xf32> to vector<1x1x16x64xf32>
    %3 = vector.shape_cast %2 : vector<1x1x16x64xf32> to vector<1x1x16x64xf32>
    %4 = vector.broadcast %3 : vector<1x1x16x64xf32> to vector<4x1x16x64xf32>
    %5 = vector.shape_cast %4 : vector<4x1x16x64xf32> to vector<4x16x64xf32>
    %6 = vector.shape_cast %1 : vector<1x8x64xf32> to vector<1x1x8x64xf32>
    %7 = vector.shape_cast %6 : vector<1x1x8x64xf32> to vector<1x1x8x64xf32>
    %8 = vector.broadcast %7 : vector<1x1x8x64xf32> to vector<4x1x8x64xf32>
    %9 = vector.shape_cast %8 : vector<4x1x8x64xf32> to vector<4x8x64xf32>
    %c0_5 = arith.constant 0 : index
    %c0_6 = arith.constant 0 : index
    %c0_7 = arith.constant 0 : index
    %10 = vector.load %arg3[%c0_5, %c0_6, %c0_7] : memref<4x16x64xf32, #tpu.memory_space<vmem>>, vector<4x16x64xf32>
    %c0_8 = arith.constant 0 : index
    %c0_9 = arith.constant 0 : index
    %c0_10 = arith.constant 0 : index
    %11 = vector.load %arg4[%c0_8, %c0_9, %c0_10] : memref<4x16x64xf32, #tpu.memory_space<vmem>>, vector<4x16x64xf32>
    %c0_11 = arith.constant 0 : index
    %c0_12 = arith.constant 0 : index
    %c0_13 = arith.constant 0 : index
    %12 = vector.load %arg5[%c0_11, %c0_12, %c0_13] : memref<4x16x64xf32, #tpu.memory_space<vmem>>, vector<4x16x64xf32>
    %c0_14 = arith.constant 0 : index
    %c0_15 = arith.constant 0 : index
    %c0_16 = arith.constant 0 : index
    %13 = vector.load %arg6[%c0_14, %c0_15, %c0_16] : memref<4x16x64xf32, #tpu.memory_space<vmem>>, vector<4x16x64xf32>
    %cst = arith.constant dense<0.000000e+00> : vector<4x16x16xf32>
    %14 = tpu.matmul %5, %10, %cst {dimension_numbers = #tpu.dot_dimension_numbers<[2], [2], [1], [1], [0, 0, 0, 1, 1, 1], [0], [0]>} : vector<4x16x64xf32>, vector<4x16x64xf32>, vector<4x16x16xf32> -> vector<4x16x16xf32>
    %cst_17 = arith.constant dense<0.000000e+00> : vector<4x8x16xf32>
    %15 = tpu.matmul %9, %11, %cst_17 {dimension_numbers = #tpu.dot_dimension_numbers<[2], [2], [1], [1], [0, 0, 0, 1, 1, 1], [0], [0]>} : vector<4x8x64xf32>, vector<4x16x64xf32>, vector<4x8x16xf32> -> vector<4x8x16xf32>
    %cst_18 = arith.constant dense<0.000000e+00> : vector<4x8x16xf32>
    %16 = tpu.matmul %9, %12, %cst_18 {dimension_numbers = #tpu.dot_dimension_numbers<[2], [2], [1], [1], [0, 0, 0, 1, 1, 1], [0], [0]>} : vector<4x8x64xf32>, vector<4x16x64xf32>, vector<4x8x16xf32> -> vector<4x8x16xf32>
    %cst_19 = arith.constant dense<0.000000e+00> : vector<4x16x8xf32>
    %17 = tpu.matmul %14, %15, %cst_19 {dimension_numbers = #tpu.dot_dimension_numbers<[2], [2], [1], [1], [0, 0, 0, 1, 1, 1], [0], [0]>} : vector<4x16x16xf32>, vector<4x8x16xf32>, vector<4x16x8xf32> -> vector<4x16x8xf32>
    %cst_20 = arith.constant dense<0xFF800000> : vector<4x16xf32>
    %18 = vector.multi_reduction <maximumf>, %17, %cst_20 [2] : vector<4x16x8xf32> to vector<4x16xf32>
    %19 = vector.shape_cast %18 : vector<4x16xf32> to vector<4x16x1xf32>
    %20 = vector.broadcast %19 : vector<4x16x1xf32> to vector<4x16x8xf32>
    %21 = arith.subf %17, %20 : vector<4x16x8xf32>
    %22 = math.exp %21 : vector<4x16x8xf32>
    %cst_21 = arith.constant dense<0.000000e+00> : vector<4x16xf32>
    %23 = vector.multi_reduction <add>, %22, %cst_21 [2] : vector<4x16x8xf32> to vector<4x16xf32>
    %24 = vector.shape_cast %23 : vector<4x16xf32> to vector<4x16x1xf32>
    %25 = tpu.reciprocal %24 : vector<4x16x1xf32> -> vector<4x16x1xf32>
    %26 = vector.broadcast %25 : vector<4x16x1xf32> to vector<4x16x8xf32>
    %27 = arith.mulf %22, %26 : vector<4x16x8xf32>
    %cst_22 = arith.constant dense<0.000000e+00> : vector<4x16x16xf32>
    %28 = tpu.matmul %27, %16, %cst_22 {dimension_numbers = #tpu.dot_dimension_numbers<[2], [1], [1], [2], [0, 0, 0, 1, 1, 2], [0], [0]>} : vector<4x16x8xf32>, vector<4x8x16xf32>, vector<4x16x16xf32> -> vector<4x16x16xf32>
    %cst_23 = arith.constant dense<0.000000e+00> : vector<4x16x64xf32>
    %29 = tpu.matmul %28, %13, %cst_23 {dimension_numbers = #tpu.dot_dimension_numbers<[2], [1], [1], [2], [0, 0, 0, 1, 1, 2], [0], [0]>} : vector<4x16x16xf32>, vector<4x16x64xf32>, vector<4x16x64xf32> -> vector<4x16x64xf32>
    %30 = vector.shape_cast %29 : vector<4x16x64xf32> to vector<4x1x16x64xf32>
    %cst_24 = arith.constant dense<0.000000e+00> : vector<1x16x64xf32>
    %31 = vector.multi_reduction <add>, %30, %cst_24 [0] : vector<4x1x16x64xf32> to vector<1x16x64xf32>
    %c0_25 = arith.constant 0 : index
    %c0_26 = arith.constant 0 : index
    %32 = vector.load %arg7[%c0_25, %c0_26] : memref<1x64xf32, #tpu.memory_space<vmem>>, vector<1x64xf32>
    %33 = vector.shape_cast %32 : vector<1x64xf32> to vector<1x1x64xf32>
    %34 = vector.broadcast %33 : vector<1x1x64xf32> to vector<1x16x64xf32>
    %35 = arith.addf %31, %34 : vector<1x16x64xf32>
    %cst_27 = arith.constant dense<0.000000e+00> : vector<1x16xf32>
    %36 = vector.multi_reduction <add>, %35, %cst_27 [2] : vector<1x16x64xf32> to vector<1x16xf32>
    %37 = vector.shape_cast %36 : vector<1x16xf32> to vector<1x16x1xf32>
    %38 = arith.mulf %35, %35 : vector<1x16x64xf32>
    %cst_28 = arith.constant dense<0.000000e+00> : vector<1x16xf32>
    %39 = vector.multi_reduction <add>, %38, %cst_28 [2] : vector<1x16x64xf32> to vector<1x16xf32>
    %40 = vector.shape_cast %39 : vector<1x16xf32> to vector<1x16x1xf32>
    %cst_29 = arith.constant 1.562500e-02 : f32
    %41 = vector.broadcast %cst_29 : f32 to vector<1x16x1xf32>
    %42 = arith.mulf %37, %41 : vector<1x16x1xf32>
    %cst_30 = arith.constant 1.562500e-02 : f32
    %43 = vector.broadcast %cst_30 : f32 to vector<1x16x1xf32>
    %44 = arith.mulf %40, %43 : vector<1x16x1xf32>
    %45 = arith.mulf %42, %42 : vector<1x16x1xf32>
    %46 = arith.subf %44, %45 : vector<1x16x1xf32>
    %47 = vector.broadcast %42 : vector<1x16x1xf32> to vector<1x16x64xf32>
    %48 = arith.subf %35, %47 : vector<1x16x64xf32>
    %cst_31 = arith.constant 9.99999974E-6 : f32
    %49 = vector.broadcast %cst_31 : f32 to vector<1x16x1xf32>
    %50 = arith.addf %46, %49 : vector<1x16x1xf32>
    %51 = math.rsqrt %50 : vector<1x16x1xf32>
    %52 = vector.broadcast %51 : vector<1x16x1xf32> to vector<1x16x64xf32>
    %53 = arith.mulf %48, %52 : vector<1x16x64xf32>
    %c0_32 = arith.constant 0 : index
    %c0_33 = arith.constant 0 : index
    %54 = vector.load %arg8[%c0_32, %c0_33] : memref<1x64xf32, #tpu.memory_space<vmem>>, vector<1x64xf32>
    %55 = vector.shape_cast %54 : vector<1x64xf32> to vector<1x1x64xf32>
    %56 = vector.broadcast %55 : vector<1x1x64xf32> to vector<1x16x64xf32>
    %57 = arith.mulf %53, %56 : vector<1x16x64xf32>
    %c0_34 = arith.constant 0 : index
    %c0_35 = arith.constant 0 : index
    %58 = vector.load %arg9[%c0_34, %c0_35] : memref<1x64xf32, #tpu.memory_space<vmem>>, vector<1x64xf32>
    %59 = vector.shape_cast %58 : vector<1x64xf32> to vector<1x1x64xf32>
    %60 = vector.broadcast %59 : vector<1x1x64xf32> to vector<1x16x64xf32>
    %61 = arith.addf %57, %60 : vector<1x16x64xf32>
    %c0_36 = arith.constant 0 : index
    %c0_37 = arith.constant 0 : index
    %c0_38 = arith.constant 0 : index
    %62 = vector.load %arg1[%c0_36, %c0_37, %c0_38] : memref<1x16x64xf32, #tpu.memory_space<vmem>>, vector<1x16x64xf32>
    %63 = arith.addf %62, %61 : vector<1x16x64xf32>
    %c0_39 = arith.constant 0 : index
    %c0_40 = arith.constant 0 : index
    %c0_41 = arith.constant 0 : index
    %64 = vector.load %arg10[%c0_39, %c0_40, %c0_41] : memref<1x16x64xf32, #tpu.memory_space<vmem>>, vector<1x16x64xf32>
    tpu.vector_store %arg10[%c0_39, %c0_40, %c0_41], %63 {strides = array<i32>} : memref<1x16x64xf32, #tpu.memory_space<vmem>>, vector<1x16x64xf32>,
    return
  }
  func.func @transform_0(%arg0: i32) -> (i32, i32, i32) {
    %c0_i32 = arith.constant 0 : i32
    %c0_i32_0 = arith.constant 0 : i32
    %c0_i32_1 = arith.constant 0 : i32
    return %arg0, %c0_i32, %c0_i32_0 : i32, i32, i32
  }
  func.func @transform_1(%arg0: i32) -> (i32, i32, i32) {
    %c0_i32 = arith.constant 0 : i32
    %c0_i32_0 = arith.constant 0 : i32
    %c0_i32_1 = arith.constant 0 : i32
    return %arg0, %c0_i32, %c0_i32_0 : i32, i32, i32
  }
  func.func @transform_2(%arg0: i32) -> (i32, i32, i32) {
    %c0_i32 = arith.constant 0 : i32
    %c0_i32_0 = arith.constant 0 : i32
    %c0_i32_1 = arith.constant 0 : i32
    %c0_i32_2 = arith.constant 0 : i32
    return %c0_i32, %c0_i32_0, %c0_i32_1 : i32, i32, i32
  }
  func.func @transform_3(%arg0: i32) -> (i32, i32, i32) {
    %c0_i32 = arith.constant 0 : i32
    %c0_i32_0 = arith.constant 0 : i32
    %c0_i32_1 = arith.constant 0 : i32
    %c0_i32_2 = arith.constant 0 : i32
    return %c0_i32, %c0_i32_0, %c0_i32_1 : i32, i32, i32
  }
  func.func @transform_4(%arg0: i32) -> (i32, i32, i32) {
    %c0_i32 = arith.constant 0 : i32
    %c0_i32_0 = arith.constant 0 : i32
    %c0_i32_1 = arith.constant 0 : i32
    %c0_i32_2 = arith.constant 0 : i32
    return %c0_i32, %c0_i32_0, %c0_i32_1 : i32, i32, i32
  }
  func.func @transform_5(%arg0: i32) -> (i32, i32, i32) {
    %c0_i32 = arith.constant 0 : i32
    %c0_i32_0 = arith.constant 0 : i32
    %c0_i32_1 = arith.constant 0 : i32
    %c0_i32_2 = arith.constant 0 : i32
    return %c0_i32, %c0_i32_0, %c0_i32_1 : i32, i32, i32
  }
  func.func @transform_6(%arg0: i32) -> (i32, i32) {
    %c0_i32 = arith.constant 0 : i32
    %c0_i32_0 = arith.constant 0 : i32
    %c0_i32_1 = arith.constant 0 : i32
    return %c0_i32, %c0_i32_0 : i32, i32
  }
  func.func @transform_7(%arg0: i32) -> (i32, i32) {
    %c0_i32 = arith.constant 0 : i32
    %c0_i32_0 = arith.constant 0 : i32
    %c0_i32_1 = arith.constant 0 : i32
    return %c0_i32, %c0_i32_0 : i32, i32
  }
  func.func @transform_8(%arg0: i32) -> (i32, i32) {
    %c0_i32 = arith.constant 0 : i32
    %c0_i32_0 = arith.constant 0 : i32
    %c0_i32_1 = arith.constant 0 : i32
    return %c0_i32, %c0_i32_0 : i32, i32
  }
  func.func @transform_9(%arg0: i32) -> (i32, i32, i32) {
    %c0_i32 = arith.constant 0 : i32
    %c0_i32_0 = arith.constant 0 : i32
    %c0_i32_1 = arith.constant 0 : i32
    return %arg0, %c0_i32, %c0_i32_0 : i32, i32, i32
  }
}

module attributes {stable_mosaic.version = 11 : i64} {
  func.func @_it_att_block_kernel(%arg0: i32, %arg1: memref<1x16x64xf32, #tpu.memory_space<vmem>>, %arg2: memref<1x8x64xf32, #tpu.memory_space<vmem>>, %arg3: memref<4x16x64xf32, #tpu.memory_space<vmem>>, %arg4: memref<4x16x64xf32, #tpu.memory_space<vmem>>, %arg5: memref<4x16x64xf32, #tpu.memory_space<vmem>>, %arg6: memref<4x16x64xf32, #tpu.memory_space<vmem>>, %arg7: memref<1x64xf32, #tpu.memory_space<vmem>>, %arg8: memref<1x64xf32, #tpu.memory_space<vmem>>, %arg9: memref<1x64xf32, #tpu.memory_space<vmem>>, %arg10: memref<1x16x64xf32, #tpu.memory_space<vmem>>) attributes {dimension_semantics = [#tpu.dimension_semantics<parallel>], iteration_bounds = array<i64: 2>, scalar_prefetch = 0 : i64, scratch_operands = 0 : i64, tpu.core_type = #tpu.core_type<tc>, window_params = [{transform_indices = @transform_0, window_bounds = array<i64: 1, 16, 64>}, {transform_indices = @transform_1, window_bounds = array<i64: 1, 8, 64>}, {pipeline_mode = #tpu.pipeline_mode<synchronous>, transform_indices = @transform_2, window_bounds = array<i64: 4, 16, 64>}, {pipeline_mode = #tpu.pipeline_mode<synchronous>, transform_indices = @transform_3, window_bounds = array<i64: 4, 16, 64>}, {pipeline_mode = #tpu.pipeline_mode<synchronous>, transform_indices = @transform_4, window_bounds = array<i64: 4, 16, 64>}, {pipeline_mode = #tpu.pipeline_mode<synchronous>, transform_indices = @transform_5, window_bounds = array<i64: 4, 16, 64>}, {pipeline_mode = #tpu.pipeline_mode<synchronous>, transform_indices = @transform_6, window_bounds = array<i64: 1, 64>}, {pipeline_mode = #tpu.pipeline_mode<synchronous>, transform_indices = @transform_7, window_bounds = array<i64: 1, 64>}, {pipeline_mode = #tpu.pipeline_mode<synchronous>, transform_indices = @transform_8, window_bounds = array<i64: 1, 64>}, {transform_indices = @transform_9, window_bounds = array<i64: 1, 16, 64>}]} {
    %c0 = arith.constant 0 : index
    %c0_0 = arith.constant 0 : index
    %c0_1 = arith.constant 0 : index
    %0 = vector.load %arg1[%c0, %c0_0, %c0_1] : memref<1x16x64xf32, #tpu.memory_space<vmem>>, vector<1x16x64xf32>
    %c0_2 = arith.constant 0 : index
    %c0_3 = arith.constant 0 : index
    %c0_4 = arith.constant 0 : index
    %1 = vector.load %arg2[%c0_2, %c0_3, %c0_4] : memref<1x8x64xf32, #tpu.memory_space<vmem>>, vector<1x8x64xf32>
    %2 = vector.shape_cast %0 : vector<1x16x64xf32> to vector<1x1x16x64xf32>
    %3 = vector.shape_cast %2 : vector<1x1x16x64xf32> to vector<1x1x16x64xf32>
    %4 = vector.broadcast %3 : vector<1x1x16x64xf32> to vector<4x1x16x64xf32>
    %5 = vector.shape_cast %4 : vector<4x1x16x64xf32> to vector<4x16x64xf32>
    %6 = vector.shape_cast %1 : vector<1x8x64xf32> to vector<1x1x8x64xf32>
    %7 = vector.shape_cast %6 : vector<1x1x8x64xf32> to vector<1x1x8x64xf32>
    %8 = vector.broadcast %7 : vector<1x1x8x64xf32> to vector<4x1x8x64xf32>
    %9 = vector.shape_cast %8 : vector<4x1x8x64xf32> to vector<4x8x64xf32>
    %c0_5 = arith.constant 0 : index
    %c0_6 = arith.constant 0 : index
    %c0_7 = arith.constant 0 : index
    %10 = vector.load %arg3[%c0_5, %c0_6, %c0_7] : memref<4x16x64xf32, #tpu.memory_space<vmem>>, vector<4x16x64xf32>
    %c0_8 = arith.constant 0 : index
    %c0_9 = arith.constant 0 : index
    %c0_10 = arith.constant 0 : index
    %11 = vector.load %arg4[%c0_8, %c0_9, %c0_10] : memref<4x16x64xf32, #tpu.memory_space<vmem>>, vector<4x16x64xf32>
    %c0_11 = arith.constant 0 : index
    %c0_12 = arith.constant 0 : index
    %c0_13 = arith.constant 0 : index
    %12 = vector.load %arg5[%c0_11, %c0_12, %c0_13] : memref<4x16x64xf32, #tpu.memory_space<vmem>>, vector<4x16x64xf32>
    %c0_14 = arith.constant 0 : index
    %c0_15 = arith.constant 0 : index
    %c0_16 = arith.constant 0 : index
    %13 = vector.load %arg6[%c0_14, %c0_15, %c0_16] : memref<4x16x64xf32, #tpu.memory_space<vmem>>, vector<4x16x64xf32>
    %cst = arith.constant dense<0.000000e+00> : vector<4x16x16xf32>
    %14 = tpu.matmul %5, %10, %cst {dimension_numbers = #tpu.dot_dimension_numbers<[2], [2], [1], [1], [0, 0, 0, 1, 1, 1], [0], [0]>} : vector<4x16x64xf32>, vector<4x16x64xf32>, vector<4x16x16xf32> -> vector<4x16x16xf32>
    %cst_17 = arith.constant dense<0.000000e+00> : vector<4x8x16xf32>
    %15 = tpu.matmul %9, %11, %cst_17 {dimension_numbers = #tpu.dot_dimension_numbers<[2], [2], [1], [1], [0, 0, 0, 1, 1, 1], [0], [0]>} : vector<4x8x64xf32>, vector<4x16x64xf32>, vector<4x8x16xf32> -> vector<4x8x16xf32>
    %cst_18 = arith.constant dense<0.000000e+00> : vector<4x8x16xf32>
    %16 = tpu.matmul %9, %12, %cst_18 {dimension_numbers = #tpu.dot_dimension_numbers<[2], [2], [1], [1], [0, 0, 0, 1, 1, 1], [0], [0]>} : vector<4x8x64xf32>, vector<4x16x64xf32>, vector<4x8x16xf32> -> vector<4x8x16xf32>
    %cst_19 = arith.constant dense<0.000000e+00> : vector<4x16x8xf32>
    %17 = tpu.matmul %14, %15, %cst_19 {dimension_numbers = #tpu.dot_dimension_numbers<[2], [2], [1], [1], [0, 0, 0, 1, 1, 1], [0], [0]>} : vector<4x16x16xf32>, vector<4x8x16xf32>, vector<4x16x8xf32> -> vector<4x16x8xf32>
    %cst_20 = arith.constant dense<0xFF800000> : vector<4x16xf32>
    %18 = vector.multi_reduction <maximumf>, %17, %cst_20 [2] : vector<4x16x8xf32> to vector<4x16xf32>
    %19 = vector.shape_cast %18 : vector<4x16xf32> to vector<4x16x1xf32>
    %20 = vector.broadcast %19 : vector<4x16x1xf32> to vector<4x16x8xf32>
    %21 = arith.subf %17, %20 : vector<4x16x8xf32>
    %22 = math.exp %21 : vector<4x16x8xf32>
    %cst_21 = arith.constant dense<0.000000e+00> : vector<4x16xf32>
    %23 = vector.multi_reduction <add>, %22, %cst_21 [2] : vector<4x16x8xf32> to vector<4x16xf32>
    %24 = vector.shape_cast %23 : vector<4x16xf32> to vector<4x16x1xf32>
    %25 = tpu.reciprocal %24 : vector<4x16x1xf32> -> vector<4x16x1xf32>
    %26 = vector.broadcast %25 : vector<4x16x1xf32> to vector<4x16x8xf32>
    %27 = arith.mulf %22, %26 : vector<4x16x8xf32>
    %cst_22 = arith.constant dense<0.000000e+00> : vector<4x16x16xf32>
    %28 = tpu.matmul %27, %16, %cst_22 {dimension_numbers = #tpu.dot_dimension_numbers<[2], [1], [1], [2], [0, 0, 0, 1, 1, 2], [0], [0]>} : vector<4x16x8xf32>, vector<4x8x16xf32>, vector<4x16x16xf32> -> vector<4x16x16xf32>
    %cst_23 = arith.constant dense<0.000000e+00> : vector<4x16x64xf32>
    %29 = tpu.matmul %28, %13, %cst_23 {dimension_numbers = #tpu.dot_dimension_numbers<[2], [1], [1], [2], [0, 0, 0, 1, 1, 2], [0], [0]>} : vector<4x16x16xf32>, vector<4x16x64xf32>, vector<4x16x64xf32> -> vector<4x16x64xf32>
    %30 = vector.shape_cast %29 : vector<4x16x64xf32> to vector<4x1x16x64xf32>
    %cst_24 = arith.constant dense<0.000000e+00> : vector<1x16x64xf32>
    %31 = vector.multi_reduction <add>, %30, %cst_24 [0] : vector<4x1x16x64xf32> to vector<1x16x64xf32>
    %c0_25 = arith.constant 0 : index
    %c0_26 = arith.constant 0 : index
    %32 = vector.load %arg7[%c0_25, %c0_26] : memref<1x64xf32, #tpu.memory_space<vmem>>, vector<1x64xf32>
    %33 = vector.shape_cast %32 : vector<1x64xf32> to vector<1x1x64xf32>
    %34 = vector.broadcast %33 : vector<1x1x64xf32> to vector<1x16x64xf32>
    %35 = arith.addf %31, %34 : vector<1x16x64xf32>
    %cst_27 = arith.constant dense<0.000000e+00> : vector<1x16xf32>
    %36 = vector.multi_reduction <add>, %35, %cst_27 [2] : vector<1x16x64xf32> to vector<1x16xf32>
    %37 = vector.shape_cast %36 : vector<1x16xf32> to vector<1x16x1xf32>
    %38 = arith.mulf %35, %35 : vector<1x16x64xf32>
    %cst_28 = arith.constant dense<0.000000e+00> : vector<1x16xf32>
    %39 = vector.multi_reduction <add>, %38, %cst_28 [2] : vector<1x16x64xf32> to vector<1x16xf32>
    %40 = vector.shape_cast %39 : vector<1x16xf32> to vector<1x16x1xf32>
    %cst_29 = arith.constant 1.562500e-02 : f32
    %41 = vector.broadcast %cst_29 : f32 to vector<1x16x1xf32>
    %42 = arith.mulf %37, %41 : vector<1x16x1xf32>
    %cst_30 = arith.constant 1.562500e-02 : f32
    %43 = vector.broadcast %cst_30 : f32 to vector<1x16x1xf32>
    %44 = arith.mulf %40, %43 : vector<1x16x1xf32>
    %45 = arith.mulf %42, %42 : vector<1x16x1xf32>
    %46 = arith.subf %44, %45 : vector<1x16x1xf32>
    %47 = vector.broadcast %42 : vector<1x16x1xf32> to vector<1x16x64xf32>
    %48 = arith.subf %35, %47 : vector<1x16x64xf32>
    %cst_31 = arith.constant 9.99999974E-6 : f32
    %49 = vector.broadcast %cst_31 : f32 to vector<1x16x1xf32>
    %50 = arith.addf %46, %49 : vector<1x16x1xf32>
    %51 = math.rsqrt %50 : vector<1x16x1xf32>
    %52 = vector.broadcast %51 : vector<1x16x1xf32> to vector<1x16x64xf32>
    %53 = arith.mulf %48, %52 : vector<1x16x64xf32>
    %c0_32 = arith.constant 0 : index
    %c0_33 = arith.constant 0 : index
    %54 = vector.load %arg8[%c0_32, %c0_33] : memref<1x64xf32, #tpu.memory_space<vmem>>, vector<1x64xf32>
    %55 = vector.shape_cast %54 : vector<1x64xf32> to vector<1x1x64xf32>
    %56 = vector.broadcast %55 : vector<1x1x64xf32> to vector<1x16x64xf32>
    %57 = arith.mulf %53, %56 : vector<1x16x64xf32>
    %c0_34 = arith.constant 0 : index
    %c0_35 = arith.constant 0 : index
    %58 = vector.load %arg9[%c0_34, %c0_35] : memref<1x64xf32, #tpu.memory_space<vmem>>, vector<1x64xf32>
    %59 = vector.shape_cast %58 : vector<1x64xf32> to vector<1x1x64xf32>
    %60 = vector.broadcast %59 : vector<1x1x64xf32> to vector<1x16x64xf32>
    %61 = arith.addf %57, %60 : vector<1x16x64xf32>
    %c0_36 = arith.constant 0 : index
    %c0_37 = arith.constant 0 : index
    %c0_38 = arith.constant 0 : index
    %62 = vector.load %arg1[%c0_36, %c0_37, %c0_38] : memref<1x16x64xf32, #tpu.memory_space<vmem>>, vector<1x16x64xf32>
    %63 = arith.addf %62, %61 : vector<1x16x64xf32>
    %c0_39 = arith.constant 0 : index
    %c0_40 = arith.constant 0 : index
    %c0_41 = arith.constant 0 : index
    %64 = vector.load %arg10[%c0_39, %c0_40, %c0_41] : memref<1x16x64xf32, #tpu.memory_space<vmem>>, vector<1x16x64xf32>
    tpu.vector_store %arg10[%c0_39, %c0_40, %c0_41], %63 {strides = array<i32>} : memref<1x16x64xf32, #tpu.memory_space<vmem>>, vector<1x16x64xf32>,
    return
  }
  func.func @transform_0(%arg0: i32) -> (i32, i32, i32) {
    %c0_i32 = arith.constant 0 : i32
    %c0_i32_0 = arith.constant 0 : i32
    %c0_i32_1 = arith.constant 0 : i32
    return %arg0, %c0_i32, %c0_i32_0 : i32, i32, i32
  }
  func.func @transform_1(%arg0: i32) -> (i32, i32, i32) {
    %c0_i32 = arith.constant 0 : i32
    %c0_i32_0 = arith.constant 0 : i32
    %c0_i32_1 = arith.constant 0 : i32
    return %arg0, %c0_i32, %c0_i32_0 : i32, i32, i32
  }
  func.func @transform_2(%arg0: i32) -> (i32, i32, i32) {
    %c0_i32 = arith.constant 0 : i32
    %c0_i32_0 = arith.constant 0 : i32
    %c0_i32_1 = arith.constant 0 : i32
    %c0_i32_2 = arith.constant 0 : i32
    return %c0_i32, %c0_i32_0, %c0_i32_1 : i32, i32, i32
  }
  func.func @transform_3(%arg0: i32) -> (i32, i32, i32) {
    %c0_i32 = arith.constant 0 : i32
    %c0_i32_0 = arith.constant 0 : i32
    %c0_i32_1 = arith.constant 0 : i32
    %c0_i32_2 = arith.constant 0 : i32
    return %c0_i32, %c0_i32_0, %c0_i32_1 : i32, i32, i32
  }
  func.func @transform_4(%arg0: i32) -> (i32, i32, i32) {
    %c0_i32 = arith.constant 0 : i32
    %c0_i32_0 = arith.constant 0 : i32
    %c0_i32_1 = arith.constant 0 : i32
    %c0_i32_2 = arith.constant 0 : i32
    return %c0_i32, %c0_i32_0, %c0_i32_1 : i32, i32, i32
  }
  func.func @transform_5(%arg0: i32) -> (i32, i32, i32) {
    %c0_i32 = arith.constant 0 : i32
    %c0_i32_0 = arith.constant 0 : i32
    %c0_i32_1 = arith.constant 0 : i32
    %c0_i32_2 = arith.constant 0 : i32
    return %c0_i32, %c0_i32_0, %c0_i32_1 : i32, i32, i32
  }
  func.func @transform_6(%arg0: i32) -> (i32, i32) {
    %c0_i32 = arith.constant 0 : i32
    %c0_i32_0 = arith.constant 0 : i32
    %c0_i32_1 = arith.constant 0 : i32
    return %c0_i32, %c0_i32_0 : i32, i32
  }
  func.func @transform_7(%arg0: i32) -> (i32, i32) {
    %c0_i32 = arith.constant 0 : i32
    %c0_i32_0 = arith.constant 0 : i32
    %c0_i32_1 = arith.constant 0 : i32
    return %c0_i32, %c0_i32_0 : i32, i32
  }
  func.func @transform_8(%arg0: i32) -> (i32, i32) {
    %c0_i32 = arith.constant 0 : i32
    %c0_i32_0 = arith.constant 0 : i32
    %c0_i32_1 = arith.constant 0 : i32
    return %c0_i32, %c0_i32_0 : i32, i32
  }
  func.func @transform_9(%arg0: i32) -> (i32, i32, i32) {
    %c0_i32 = arith.constant 0 : i32
    %c0_i32_0 = arith.constant 0 : i32
    %c0_i32_1 = arith.constant 0 : i32
    return %arg0, %c0_i32, %c0_i32_0 : i32, i32, i32
  }
}

</mosaic_0001>

<bundles_post_ra>
// kernel: tpu_custom_call.1
= control target key start
LH: loop header
LB: loop body
LE: loop exit
PB: predicated region body
PF: predicated region fallthrough
CT: control target
= control target key end

     0   :  { %s2636_s0 = inlined_call_operand.hbm [shape: f32[2,16,64], index: 0, kind: input, shape index: {}]   ;;  %s2637_s1 = inlined_call_operand.hbm [shape: f32[2,8,64], index: 1, kind: input, shape index: {}]   ;;  %s2638_s2 = inlined_call_operand.hbm [shape: f32[4,16,64], index: 2, kind: input, shape index: {}]   ;;  %s2639_s3 = inlined_call_operand.hbm [shape: f32[4,16,64], index: 3, kind: input, shape index: {}]   ;;  %s2640_s4 = inlined_call_operand.hbm [shape: f32[4,16,64], index: 4, kind: input, shape index: {}]   ;;  %s2641_s5 = inlined_call_operand.hbm [shape: f32[4,16,64], index: 5, kind: input, shape index: {}]   ;;  %s2642_s6 = inlined_call_operand.vmem [shape: f32[1,64], index: 6, kind: input, shape index: {}]   ;;  %s2643_s7 = inlined_call_operand.vmem [shape: f32[1,64], index: 7, kind: input, shape index: {}]   ;;  %s2644_s8 = inlined_call_operand.vmem [shape: f32[1,64], index: 8, kind: input, shape index: {}]   ;;  %s2645_s9 = inlined_call_operand.hbm [shape: f32[2,16,64], index: 9, kind: output, shape index: {}]  }
   0x1   :  { %2652 = sst [smem:[#allocation24_spill]] %s2638_s2 }
   0x2   :  { %2653 = sst [smem:[#allocation25_spill]] %s2639_s3 }
   0x3   :  { %2654 = sst [smem:[#allocation26_spill]] %s2640_s4 }
   0x4   :  { %2655 = sst [smem:[#allocation27_spill]] %s2641_s5 }
   0x5   :  { %14 = vsyncpa [#allocation3], 0 }
   0x6   :  { %16 = vsyncpa [#allocation3 + $0x1], 0 }
   0x7   :  { %17 = vsyncpa [#allocation6], 0 }
   0x8   :  { %19 = vsyncpa [#allocation6 + $0x1], 0 }
   0x9   :  { %20 = vsyncpa [#allocation9], 0 }
   0xa   :  { %21 = vsyncpa [#allocation12], 0 }
   0xb   :  { %22 = vsyncpa [#allocation4], 0 }
   0xc   :  { %24 = vsyncpa [#allocation4 + $0x1], 0  ;;  %s2167_s30 = smov 0   ;;  %s2169_s10 = smov 0  }
   0xd   :  { %s2171_s11 = smov 0   ;;  %s2173_s12 = smov 0  }
   0xe LB: > { %2656 = sst [smem:[#allocation20_spill]] %s2103_s11  ;;  %s2188_s13 = sadd.s32 4294967295, %s2107_s12   ;;  %s2107_s12 = sphi %s2173_s12, %s2686_s12   ;;  %s2103_s11 = sphi %s2171_s11, %s2688_s11   ;;  %s2099_s10 = sphi %s2169_s10, %s2690_s10   ;;  %s2095_s30 = sphi %s2167_s30, %s2689_s30  }
   0xf   : > { %s1615_s14 = sadd.s32 4294967294, %s2107_s12   ;;  %p50_p0 = scmp.ne.s32.totalorder %s2099_s10, %s2095_s30 }
  0x10   : > { %p51_p1 = scmp.eq.s32.totalorder %s2188_s13, 0  ;;  %p247_p2 = scmp.eq.s32.totalorder %s2188_s13, 1 }
  0x11   : > { %p253_p3 = scmp.eq.s32.totalorder %s1615_s14, 1  ;;  %p1616_p5 = scmp.ge.s32.totalorder %s2107_s12, 1 }
  0x12   : > { %p2197_p4 = por %p51_p1, %p50_p0  ;;  %p260_p7 = scmp.lt.s32.totalorder %s2107_s12, 3 }
  0x13   : > { %p2202_p6 = por %p253_p3, %p50_p0  ;;  %s2660_s2 = sld [smem:[#allocation24_spill]] }
  0x14   : > { %p2210_p8 = pnand %p1616_p5, %p260_p7  ;;  %s2109_s21 = smov [#allocation7]  }
  0x15   : > { %s2658_s16 = scalar_select %p2202_p6, 1, 0 }
  0x16   : > { %p1732_p9 = pneg %p2210_p8  ;;  %s273_s22 = sshll.u32 %s2109_s21, 4  ;;  %s274_s22 = int_to_ptr.vmem [resolvable:$true] %s273_s22 }
  0x17   : > { %2659 = sst [smem:[#allocation21_spill]] %s2658_s16  ;;  %s2646_s27 = smov 128  }
  0x18   : > { %p2218_p10 = pnand %p1732_p9, %p51_p1  ;;  %s2663_s3 = sld [smem:[#allocation25_spill]] }
  0x19   : > { %s271_s19 = sshll.u32 %s2660_s2, 4  ;;  %s2647_s28 = smov 8   ;;  %s272_s19 = int_to_ptr.hbm [resolvable:$true] %s271_s19 }
  0x1a   : > { %1735 = dma.hbm_to_vmem [thread:$0]  (!%p2218_p10), %s272_s19, 1024, %s274_s22, [#allocation6], %s2646_s27, %s2646_s27, %s2647_s28  }
  0x1b   : > { %s2112_s29 = smov [#allocation8]   ;;  %s2664_s4 = sld [smem:[#allocation26_spill]] }
  0x1c   : > { %s287_s14 = sshll.u32 %s2112_s29, 4  ;;  %s2665_s5 = sld [smem:[#allocation27_spill]]  ;;  %s288_s14 = int_to_ptr.vmem [resolvable:$true] %s287_s14 }
  0x1d   : > { %s2113_s25 = smov [#allocation10]   ;;  %s2114_s17 = smov [#allocation11]  }
  0x1e   : > { %s285_s26 = sshll.u32 %s2663_s3, 4  ;;  %s301_s29 = sshll.u32 %s2113_s25, 4  ;;  %s286_s26 = int_to_ptr.hbm [resolvable:$true] %s285_s26  ;;  %s302_s29 = int_to_ptr.vmem [resolvable:$true] %s301_s29 }
  0x1f   : > { %1738 = dma.hbm_to_vmem [thread:$0]  (!%p2218_p10), %s286_s26, 1024, %s288_s14, [#allocation9], %s2646_s27, %s2646_s27, %s2647_s28  }
  0x20   : > { %s315_s26 = sshll.u32 %s2114_s17, 4  ;;  %s2253_s14 = sadd.s32 1, %s2107_s12   ;;  %s316_s26 = int_to_ptr.vmem [resolvable:$true] %s315_s26 }
  0x21   : > { %s299_s21 = sshll.u32 %s2664_s4, 4  ;;  %2666 = sst [smem:[#allocation22_spill]] %s2253_s14  ;;  %s300_s21 = int_to_ptr.hbm [resolvable:$true] %s299_s21 }
  0x22   : > { %s313_s24 = sshll.u32 %s2665_s5, 4  ;;  %s37_s18 = sadd.s32 1, %s2103_s11  ;;  %s314_s24 = int_to_ptr.hbm [resolvable:$true] %s313_s24 }
  0x23   : > { %1741 = dma.hbm_to_vmem [thread:$0]  (!%p2218_p10), %s300_s21, 1024, %s302_s29, [#allocation9], %s2646_s27, %s2646_s27, %s2647_s28  }
  0x24   : > { %1744 = dma.hbm_to_vmem [thread:$0]  (!%p2218_p10), %s314_s24, 1024, %s316_s26, [#allocation12], %s2646_s27, %s2646_s27, %s2647_s28  }
  0x25   : > { %s34_s19 = ssub.s32 %s2107_s12, %s2253_s14  ;;  %p44_p12 = scmp.ne.s32.totalorder %s2103_s11, %s2099_s10 }
  0x26   : > { %p35_p13 = scmp.eq.s32.totalorder %s34_s19, 0  ;;  %p45_p0 = scmp.eq.s32.totalorder %s2107_s12, 0 }
  0x27   : > { %p2263_p3 = por %p247_p2, %p44_p12  ;;  %p1760_p5 = scmp.lt.s32.totalorder %s2107_s12, 2 }
  0x28   : > { %s2269_s23 = scalar_select %p35_p13, %s2103_s11, %s37_s18  }
  0x29   : > { %p46_p7 = por %p45_p0, %p44_p12  ;;  %s2272_s22 = sand.u32 1, %s2103_s11  }
  0x2a   : > { %2668 = sst [smem:[#allocation23_spill]] %s2269_s23  ;;  %s1622_s24 = sshll.u32 %s2272_s22, 4 }
  0x2b   : > { %s1708_s25 = sshll.u32 %s2107_s12, 4  ;;  %s342_s19 = scalar_lea.vmem [#allocation2], %s1622_s24 }
  0x2c   : > { %s347_s26 = scalar_lea.hbm %s2636_s0, %s1708_s25  ;;  %s350_s27 = sshll.u32 %s342_s19, 4  ;;  %s351_s27 = int_to_ptr.vmem [resolvable:$true] %s350_s27 }
  0x2d   : > { %s348_s28 = sshll.u32 %s347_s26, 4  ;;  %p2279_p2 = pnand %p1760_p5, %p46_p7  ;;  %s349_s28 = int_to_ptr.hbm [resolvable:$true] %s348_s28 }
  0x2e   : > { %s360_s2 = sand.u32 1, %s2107_s12   ;;  %s1625_s3 = sshll.u32 %s2272_s22, 3 }
  0x2f   : > { %s339_s4 = scalar_lea.sflag [#allocation3], %s2272_s22  ;;  %s1965_s5 = sshra.s32 %s349_s28, 4  ;;  %s1966_s5 = int_to_ptr.hbm [resolvable:$true] %s1965_s5 }
  0x30   : > { %s1967_s23 = scalar_lea.hbm %s1966_s5, 16  ;;  %p1969_p10 = pneg %p2279_p2 }
  0x31   : > { %p1968_p9 = scmp.ne.s32.totalorder %s1966_s5, %s1967_s23  ;;  %s1972_s29 = scalar_lea.hbm %s2636_s0, 32 }
  0x32   : > { %p1973_p0 = scmp.lt.s32.totalorder %s1966_s5, %s2636_s0  ;;  %p1974_p5 = scmp.lt.s32.totalorder %s1972_s29, %s1967_s23 }
  0x33   : > { %p1970_p12 = pnand %p1969_p10, %p1968_p9 }
  0x34   : > { %p1975_p7 = por %p1974_p5, %p1973_p0 }
  0x35   : > { %p1971_p13 = pneg %p1970_p12 }
  0x37   : > { %p1976_p11 = pnand %p1975_p7, %p1971_p13 }
  0x39   : > { %1979 = shalt.err (!%p1976_p11)
}
  0x3a   : > { %s2670_s22 = smov 8   ;;  %s2671_s19 = smov 128  }
  0x3b   : > { %1748 = dma.hbm_to_vmem [thread:$0]  (!%p2279_p2), %s349_s28, 256, %s351_s27, %s339_s4, %s2671_s19, %s2671_s19, %s2670_s22  }
  0x3c   : > { %s1626_s11 = sshll.u32 %s2107_s12, 3  ;;  %s364_s16 = scalar_lea.vmem [#allocation5], %s1625_s3 }
  0x3d   : > { %s368_s25 = scalar_lea.hbm %s2637_s1, %s1626_s11  ;;  %s372_s17 = sshll.u32 %s364_s16, 4  ;;  %s373_s17 = int_to_ptr.vmem [resolvable:$true] %s372_s17 }
  0x3e   : > { %s370_s5 = sshll.u32 %s368_s25, 4  ;;  %s361_s23 = scalar_lea.sflag [#allocation6], %s360_s2  ;;  %s371_s5 = int_to_ptr.hbm [resolvable:$true] %s370_s5 }
  0x3f   : > { %s1995_s29 = sshra.s32 %s371_s5, 4  ;;  %s2002_s28 = scalar_lea.hbm %s2637_s1, 16  ;;  %s1996_s29 = int_to_ptr.hbm [resolvable:$true] %s1995_s29 }
  0x40   : > { %s1997_s26 = scalar_lea.hbm %s1996_s29, 8  ;;  %p2003_p13 = scmp.lt.s32.totalorder %s1996_s29, %s2637_s1 }
  0x41   : > { %p1998_p11 = scmp.ne.s32.totalorder %s1996_s29, %s1997_s26  ;;  %p2004_p0 = scmp.lt.s32.totalorder %s2002_s28, %s1997_s26 }
  0x43   : > { %p2000_p9 = pnand %p1998_p11, %p1969_p10  ;;  %p2005_p5 = por %p2004_p0, %p2003_p13 }
  0x45   : > { %p2001_p12 = pneg %p2000_p9 }
  0x47   : > { %p2006_p7 = pnand %p2005_p5, %p2001_p12 }
  0x49   : > { %2009 = shalt.err (!%p2006_p7)
}
  0x4a   : > { %1751 = dma.hbm_to_vmem [thread:$0]  (!%p2279_p2), %s371_s5, 128, %s373_s17, %s361_s23  }
  0x4b   : > { %381 = sbr.rel (%p2210_p8) target bundleno = 1087 (0x43f), region = 56  ;;  %s2320_s2 = sand.u32 (!%p2210_p8), 1, %s2099_s10  }
  0x4c   : > { %s1628_s3 = sshll.u32 (!%p2210_p8), %s2320_s2, 4  ;;  %s384_s16 = scalar_lea.sflag (!%p2210_p8), [#allocation3], %s2320_s2 }
  0x4d   : > { %s2326_s22 = scalar_lea.vmem (!%p2210_p8), [#allocation2], %s1628_s3 }
  0x50   : > { %2070 = dma.done.wait (%p2197_p4), %s384_s16, 256  }
  0x51   : > { %2072 = vsyncadd (%p2197_p4), %s384_s16, 4294967040  ;;  %s393_s20 = sand.u32 1, %s2188_s13   ;;  %s1629_s18 = sshll.u32 %s2320_s2, 3 }
  0x52   : > { %s394_s19 = scalar_lea.sflag [#allocation6], %s393_s20  ;;  %s2334_s24 = scalar_lea.vmem [#allocation5], %s1629_s18 }
  0x53   : > { %2074 = dma.done.wait (%p2197_p4), %s394_s19, 128  }
  0x54   : > { %2076 = vsyncadd (%p2197_p4), %s394_s19, 4294967168 }
  0x55   : > { %2078 = dma.done.wait (%p51_p1), [#allocation6], 1024  }
  0x56   : > { %2080 = vsyncadd (%p51_p1), [#allocation6], 4294966272 }
  0x57   : > { %2082 = dma.done.wait (%p51_p1), [#allocation9], 2048  }
  0x58   : > { %2084 = vsyncadd (%p51_p1), [#allocation9], 4294965248 }
  0x59   : > { %2086 = dma.done.wait (%p51_p1), [#allocation12], 1024  }
  0x5a   : > { %2088 = vsyncadd (%p51_p1), [#allocation12], 4294966272  ;;  %vm493_vm0 = vcmask 523264   ;;  %v464_v0 = vld [vmem:[#allocation7 + $0x18] sm:$0xff]  ;;  %v466_v1 = vld [vmem:[#allocation7 + $0x28] sm:$0xff]  ;;  %vm827_vm1 = vcmask 130048  }
  0x5b   : > { %v468_v2 = vld [vmem:[#allocation7 + $0x38] sm:$0xff]  ;;  %1639 = vmatpush.xpose.msk.msra.mxu1 %vm493_vm0, %v464_v0  ;;  %1643 = vmatpush.xpose.msk.msra.mxu2 %vm493_vm0, %v466_v1  ;;  %v463_v3 = vld [vmem:[#allocation7 + $0x10] sm:$0xff]  ;;  %v465_v4 = vld [vmem:[#allocation7 + $0x20] sm:$0xff]  ;;  %vm956_vm2 = vcmask 64512   ;;  %s1709_s26 = sshll.u32 %s2188_s13, 4  ;;  %s457_s14 = scalar_lea.vmem [#allocation13], %s1628_s3 }
  0x5c   : > { %1647 = vmatpush.xpose.msk.msra.mxu3 %vm493_vm0, %v468_v2  ;;  %v462_v5 = vld [vmem:[#allocation7 + $0x8] sm:$0xff]  ;;  %v467_v6 = vld [vmem:[#allocation7 + $0x30] sm:$0xff]  ;;  %v461_v8 = vld [vmem:[#allocation7] sm:$0xff]  ;;  %s1477_s28 = scalar_lea.hbm %s2645_s9, %s1709_s26  ;;  %s1478_s13 = sshll.u32 %s457_s14, 4  ;;  %s1479_s13 = int_to_ptr.vmem [resolvable:$true] %s1478_s13 }
  0x5d   : > { %1635 = vmatpush.xpose.msk.msra.mxu0 %vm493_vm0, %v462_v5  ;;  %v474_v7 = vld [vmem:[#allocation8 + $0x28] sm:$0xff]  ;;  %v472_v9 = vld [vmem:[#allocation8 + $0x18] sm:$0xff]  ;;  %v2359_v10 = vld [vmem:[%s2326_s22] sm:$0xff]  ;;  %s1480_s11 = sshll.u32 %s1477_s28, 4  ;;  %s1466_s16 = scalar_lea.sflag [#allocation4], %s2320_s2  ;;  %s1481_s11 = int_to_ptr.hbm [resolvable:$true] %s1480_s11 }
  0x5e   : > { %v470_v11 = vld [vmem:[#allocation8 + $0x8] sm:$0xff]  ;;  %v476_v12 = vld [vmem:[#allocation8 + $0x38] sm:$0xff]  ;;  %v471_v13 = vld [vmem:[#allocation8 + $0x10] sm:$0xff]  ;;  %s2045_s19 = scalar_lea.hbm %s2645_s9, 32 }
  0x5f   : > { %1640 = vmatpush.xpose.msk.msra.mxu1 %vm493_vm0, %v463_v3  ;;  %1644 = vmatpush.xpose.msk.msra.mxu2 %vm493_vm0, %v465_v4  ;;  %v473_v14 = vld [vmem:[#allocation8 + $0x20] sm:$0xff]  ;;  %v475_v16 = vld [vmem:[#allocation8 + $0x30] sm:$0xff]  ;;  %v2378_v17 = vld [vmem:[%s2326_s22 + $0x8] sm:$0xff]  ;;  %s2039_s22 = sshra.s32 %s1481_s11, 4  ;;  %s2040_s22 = int_to_ptr.hbm [resolvable:$true] %s2039_s22 }
  0x60   : > { %1648 = vmatpush.xpose.msk.msra.mxu3 %vm493_vm0, %v467_v6  ;;  %v469_v15 = vld [vmem:[#allocation8] sm:$0xff]  ;;  %v460_v18 = vld [vmem:[%s2334_s24] sm:$0xff]  ;;  %v482_v21 = vld [vmem:[#allocation10 + $0x28] sm:$0xff]  ;;  %s2041_s20 = scalar_lea.hbm %s2040_s22, 16  ;;  %p2046_p2 = scmp.lt.s32.totalorder %s2040_s22, %s2645_s9 }
  0x61   : > { %1636 = vmatpush.xpose.msk.msra.mxu0 %vm493_vm0, %v461_v8  ;;  %v480_v19 = vld [vmem:[#allocation10 + $0x18] sm:$0xff]  ;;  %v479_v20 = vld [vmem:[#allocation10 + $0x10] sm:$0xff]  ;;  %v478_v23 = vld [vmem:[#allocation10 + $0x8] sm:$0xff]  ;;  %p2042_p1 = scmp.ne.s32.totalorder %s2040_s22, %s2041_s20  ;;  %p2047_p10 = scmp.lt.s32.totalorder %s2045_s19, %s2041_s20 }
  0x62   : > { %1641 = vmatmul.msk.f32.vlgmr.msra.gmra.mxu1 %vm493_vm0, %v2359_v10  ;;  %1645 = vmatmul.msk.f32.vlgmr.msra.gmra.mxu2 %vm493_vm0, %v2359_v10  ;;  %v484_v22 = vld [vmem:[#allocation10 + $0x38] sm:$0xff]  ;;  %v481_v24 = vld [vmem:[#allocation10 + $0x20] sm:$0xff]  ;;  %v483_v25 = vld [vmem:[#allocation10 + $0x30] sm:$0xff] }
  0x63   : > { %1657 = vmatpush.xpose.msk.msrb.mxu2 %vm493_vm0, %v474_v7  ;;  %1654 = vmatpush.xpose.msk.msrb.mxu1 %vm493_vm0, %v472_v9  ;;  %v477_v26 = vld [vmem:[#allocation10] sm:$0xff]  ;;  %p2043_p4 = pnand %p2042_p1, %p2263_p3  ;;  %p2048_p11 = por %p2047_p10, %p2046_p2 }
  0x64   : > { %1649 = vmatmul.msk.f32.vlgmr.msra.gmra.mxu3 %vm493_vm0, %v2359_v10  ;;  %1637 = vmatmul.msk.f32.vlgmr.msra.gmra.mxu0 %vm493_vm0, %v2359_v10 }
  0x65   : > { %1651 = vmatpush.xpose.msk.msrb.mxu0 %vm493_vm0, %v470_v11  ;;  %1660 = vmatpush.xpose.msk.msrb.mxu3 %vm493_vm0, %v476_v12  ;;  %p2044_p8 = pneg %p2043_p4 }
  0x67   : > { %1655 = vmatpush.xpose.msk.msrb.mxu1 %vm493_vm0, %v471_v13  ;;  %1658 = vmatpush.xpose.msk.msrb.mxu2 %vm493_vm0, %v473_v14  ;;  %p2049_p9 = pnand %p2048_p11, %p2044_p8 }
  0x69   : > { %1652 = vmatpush.xpose.msk.msrb.mxu0 %vm493_vm0, %v469_v15  ;;  %1661 = vmatpush.xpose.msk.msrb.mxu3 %vm493_vm0, %v475_v16 }
  0x6a   : > { %1642 = vmatmul.msk.f32.gmra.mxu1 %vm493_vm0, %v2378_v17  ;;  %1646 = vmatmul.msk.f32.gmra.mxu2 %vm493_vm0, %v2378_v17 }
  0x6b   : > { %1666 = vmatpush.xpose.msk.msra.mxu1 %vm493_vm0, %v480_v19  ;;  %1669 = vmatpush.xpose.msk.msra.mxu2 %vm493_vm0, %v482_v21 }
  0x6c   : > { %1650 = vmatmul.msk.f32.gmra.mxu3 %vm493_vm0, %v2378_v17  ;;  %1638 = vmatmul.msk.f32.gmra.mxu0 %vm493_vm0, %v2378_v17 }
  0x6d   : > { %1672 = vmatpush.xpose.msk.msra.mxu3 %vm493_vm0, %v484_v22  ;;  %1663 = vmatpush.xpose.msk.msra.mxu0 %vm493_vm0, %v478_v23 }
  0x6f   : > { %1667 = vmatpush.xpose.msk.msra.mxu1 %vm493_vm0, %v479_v20  ;;  %1670 = vmatpush.xpose.msk.msra.mxu2 %vm493_vm0, %v481_v24 }
  0x71   : > { %1673 = vmatpush.xpose.msk.msra.mxu3 %vm493_vm0, %v483_v25  ;;  %1664 = vmatpush.xpose.msk.msra.mxu0 %vm493_vm0, %v477_v26 }
  0x72   : > { %1656 = vmatmul.msk.f32.vlgmr.msrb.gmra.mxu1 %vm493_vm0, %v460_v18  ;;  %1659 = vmatmul.msk.f32.vlgmr.msrb.gmra.mxu2 %vm493_vm0, %v460_v18 }
  0x74   : > { %1662 = vmatmul.msk.f32.vlgmr.msrb.gmra.mxu3 %vm493_vm0, %v460_v18  ;;  %1653 = vmatmul.msk.f32.vlgmr.msrb.gmra.mxu0 %vm493_vm0, %v460_v18 }
  0x7a   : > { %1668 = vmatmul.msk.f32.vlgmr.msra.gmra.mxu1 %vm493_vm0, %v460_v18  ;;  %1671 = vmatmul.msk.f32.vlgmr.msra.gmra.mxu2 %vm493_vm0, %v460_v18 }
  0x7c   : > { %1674 = vmatmul.msk.f32.vlgmr.msra.gmra.mxu3 %vm493_vm0, %v460_v18  ;;  %1665 = vmatmul.msk.f32.vlgmr.msra.gmra.mxu0 %vm493_vm0, %v460_v18 }
  0xdf   : > { %v552_v27 = vpop.f32.mrf.mxu1 }
  0xe1   : > { %v523_v28 = vpop.f32.mrf.mxu0 }
  0xe5   : > { %v581_v29 = vpop.f32.mrf.mxu2 }
  0xe7   : > { %v610_v30 = vpop.f32.mrf.mxu3  ;;  %v555_v31 = vpop.f32.mrf.mxu1 }
  0xe9   : > { %v526_v32 = vpop.f32.mrf.mxu0 }
  0xed   : > { %v584_v33 = vpop.f32.mrf.mxu2 }
  0xef   : > { %v613_v34 = vpop.f32.mrf.mxu3  ;;  %v668_v35 = vpop.f32.mrf.mxu1 }
  0xf0   : > { %1678 = vmatpush.xpose.msk.msrb.mxu1 %vm827_vm1, %v668_v35 }
  0xf1   : > { %v642_v36 = vpop.f32.mrf.mxu0 }
  0xf2   : > { %1675 = vmatpush.xpose.msk.msrb.mxu0 %vm827_vm1, %v642_v36 }
  0xf3   : > { %1679 = vmatmul.msk.f32.vlgmr.msrb.gmra.mxu1 %vm827_vm1, %v552_v27 }
  0xf5   : > { %v694_v37 = vpop.f32.mrf.mxu2  ;;  %1676 = vmatmul.msk.f32.vlgmr.msrb.gmra.mxu0 %vm827_vm1, %v523_v28 }
  0xf6   : > { %1681 = vmatpush.xpose.msk.msrb.mxu2 %vm827_vm1, %v694_v37 }
  0xf7   : > { %v720_v38 = vpop.f32.mrf.mxu3  ;;  %v772_v39 = vpop.f32.mrf.mxu1 }
  0xf8   : > { %1684 = vmatpush.xpose.msk.msrb.mxu3 %vm827_vm1, %v720_v38  ;;  %1199 = vmatpush.msra.mxu1 %v772_v39 }
  0xf9   : > { %1682 = vmatmul.msk.f32.vlgmr.msrb.gmra.mxu2 %vm827_vm1, %v581_v29  ;;  %v746_v40 = vpop.f32.mrf.mxu0 }
  0xfa   : > { %1170 = vmatpush.msra.mxu0 %v746_v40 }
  0xfb   : > { %1685 = vmatmul.msk.f32.vlgmr.msrb.gmra.mxu3 %vm827_vm1, %v610_v30  ;;  %1680 = vmatmul.msk.f32.gmra.mxu1 %vm827_vm1, %v555_v31 }
  0xfd   : > { %1677 = vmatmul.msk.f32.gmra.mxu0 %vm827_vm1, %v526_v32  ;;  %v798_v41 = vpop.f32.mrf.mxu2 }
  0xfe   : > { %1228 = vmatpush.msra.mxu2 %v798_v41 }
  0xff   : > { %v824_v42 = vpop.f32.mrf.mxu3 }
 0x100   : > { %1257 = vmatpush.msra.mxu3 %v824_v42 }
 0x101   : > { %1683 = vmatmul.msk.f32.gmra.mxu2 %vm827_vm1, %v584_v33 }
 0x103   : > { %1686 = vmatmul.msk.f32.gmra.mxu3 %vm827_vm1, %v613_v34 }
 0x170   : > { %v886_v43 = vpop.f32.mrf.mxu1 }
 0x171   : > { %v963_v44 = vsel %vm956_vm2, %v886_v43, -inf }
 0x172   : > { %964 = vmax.xlane.f32.xlu2 %v963_v44  ;;  %v854_v48 = vpop.f32.mrf.mxu0 }
 0x173   : > { %v957_v55 = vsel %vm956_vm2, %v854_v48, -inf }
 0x178   : > { %v889_v57 = vpop.f32.mrf.mxu1 }
 0x179   : > { %v966_v58 = vsel %vm956_vm2, %v889_v57, -inf }
 0x17a   : > { %v857_v54 = vpop.f32.mrf.mxu0 }
 0x17b   : > { %v960_v56 = vsel %vm956_vm2, %v857_v54, -inf }
 0x17c   : > { %v918_v45 = vpop.f32.mrf.mxu2 }
 0x17d   : > { %v969_v47 = vsel %vm956_vm2, %v918_v45, -inf }
 0x17e   : > { %v950_v46 = vpop.f32.mrf.mxu3  ;;  %970 = vmax.xlane.f32.xlu0 %v969_v47  ;;  %v490_v47 = vld [vmem:[#allocation11 + $0x28] sm:$0xff] }
 0x17f   : > { %v975_v51 = vsel %vm956_vm2, %v950_v46, -inf  ;;  %1343 = vmatpush.msrb.mxu2 %v490_v47 }
 0x184   : > { %v921_v49 = vpop.f32.mrf.mxu2 }
 0x185   : > { %v972_v52 = vsel %vm956_vm2, %v921_v49, -inf }
 0x186   : > { %v953_v50 = vpop.f32.mrf.mxu3  ;;  %976 = vmax.xlane.f32.xlu0 %v975_v51  ;;  %973 = vmax.xlane.f32.xlu1 %v972_v52 }
 0x187   : > { %v978_v53 = vsel %vm956_vm2, %v953_v50, -inf }
 0x188   : > { %979 = vmax.xlane.f32.xlu2 %v978_v53 }
 0x18e   : > { %958 = vmax.xlane.f32.xlu1 %v957_v55  ;;  %961 = vmax.xlane.f32.xlu0 %v960_v56 }
 0x196   : > { %967 = vmax.xlane.f32.xlu1 %v966_v58 }
 0x1e5   : > { %v965_v60 = vpop.xlane.xlu2 %964 }
 0x1e6   : > { %v983_v5 = vsub.f32 %v886_v43, %v965_v60 }
 0x1e8   : > { %v993_v11 = vmul.f32 1.442695, %v983_v5 }
 0x1f1   : > { %v971_v59 = vpop.xlane.xlu0 %970 }
 0x1f2   : > { %v985_v61 = vsub.f32 %v918_v45, %v971_v59 }
 0x1f4   : > { %v997_v62 = vmul.f32 1.442695, %v985_v61 }
 0x1f6   : > { %1809 = vpow2.f32 %v997_v62 }
 0x1f9   : > { %v977_v63 = vpop.xlane.xlu0 %976  ;;  %v974_v0 = vpop.xlane.xlu1 %973 }
 0x1fa   : > { %v987_v1 = vsub.f32 %v950_v46, %v977_v63  ;;  %v986_v2 = vsub.f32 %v921_v49, %v974_v0 }
 0x1fb   : > { %v980_v3 = vpop.xlane.xlu2 %979 }
 0x1fc   : > { %v2427_v4 = vpop.eup %1809  ;;  %v1001_v6 = vmul.f32 1.442695, %v987_v1  ;;  %v999_v7 = vmul.f32 1.442695, %v986_v2  ;;  %v988_v8 = vsub.f32 %v953_v50, %v980_v3 }
 0x1fd   : > { %v1017_v9 = vsel %vm956_vm2, %v2427_v4, 0.0 }
 0x1fe   : > { %1811 = vpow2.f32 %v1001_v6  ;;  %1018 = vadd.xlane.f32.xlu2 %v1017_v9  ;;  %v1003_v12 = vmul.f32 1.442695, %v988_v8 }
 0x1ff   : > { %1813 = vpow2.f32 %v999_v7 }
 0x200   : > { %1815 = vpow2.f32 %v993_v11 }
 0x201   : > { %v959_v13 = vpop.xlane.xlu1 %958  ;;  %v962_v14 = vpop.xlane.xlu0 %961  ;;  %1817 = vpow2.f32 %v1003_v12 }
 0x202   : > { %v981_v15 = vsub.f32 %v854_v48, %v959_v13  ;;  %v982_v19 = vsub.f32 %v857_v54, %v962_v14  ;;  %v492_v48 = vld [vmem:[#allocation11 + $0x38] sm:$0xff] }
 0x203   : > { %1372 = vmatpush.msrb.mxu3 %v492_v48 }
 0x204   : > { %v2431_v16 = vpop.eup %1811  ;;  %v989_v18 = vmul.f32 1.442695, %v981_v15  ;;  %v991_v23 = vmul.f32 1.442695, %v982_v19 }
 0x205   : > { %v2433_v20 = vpop.eup %1813  ;;  %v1023_v21 = vsel %vm956_vm2, %v2431_v16, 0.0 }
 0x206   : > { %1819 = vpow2.f32 %v989_v18  ;;  %v1020_v22 = vsel %vm956_vm2, %v2433_v20, 0.0  ;;  %1024 = vadd.xlane.f32.xlu0 %v1023_v21  ;;  %v2439_v25 = vpop.eup %1815 }
 0x207   : > { %1021 = vadd.xlane.f32.xlu1 %v1020_v22  ;;  %v2441_v27 = vpop.eup %1817  ;;  %1821 = vpow2.f32 %v991_v23  ;;  %v1011_v31 = vsel %vm956_vm2, %v2439_v25, 0.0 }
 0x208   : > { %v1026_v32 = vsel %vm956_vm2, %v2441_v27, 0.0 }
 0x209   : > { %v968_v24 = vpop.xlane.xlu1 %967 }
 0x20a   : > { %v984_v26 = vsub.f32 %v889_v57, %v968_v24 }
 0x20c   : > { %v2443_v28 = vpop.eup %1819  ;;  %v995_v29 = vmul.f32 1.442695, %v984_v26 }
 0x20d   : > { %v1005_v30 = vsel %vm956_vm2, %v2443_v28, 0.0  ;;  %v2451_v33 = vpop.eup %1821 }
 0x20e   : > { %1823 = vpow2.f32 %v995_v29  ;;  %1006 = vadd.xlane.f32.xlu2 %v1005_v30  ;;  %1012 = vadd.xlane.f32.xlu0 %v1011_v31  ;;  %v1008_v36 = vsel %vm956_vm2, %v2451_v33, 0.0  ;;  %v487_v29 = vld [vmem:[#allocation11 + $0x10] sm:$0xff] }
 0x20f   : > { %1027 = vadd.xlane.f32.xlu1 %v1026_v32 }
 0x214   : > { %v2453_v34 = vpop.eup %1823 }
 0x215   : > { %v1014_v35 = vsel %vm956_vm2, %v2453_v34, 0.0 }
 0x216   : > { %1015 = vadd.xlane.f32.xlu0 %v1014_v35  ;;  %1009 = vadd.xlane.f32.xlu2 %v1008_v36 }
 0x271   : > { %v1019_v37 = vpop.xlane.xlu2 %1018 }
 0x272   : > { %1825 = vrcp.f32 %v1019_v37  ;;  %v1094_v44 = vand.u32 2147483647, %v1019_v37  ;;  %v1096_v45 = vand.u32 2147483648, %v1019_v37  ;;  %vm1090_vm4 = vweird.f32 %v1019_v37 }
 0x274   : > { %vm1095_vm6 = vcmp.eq.f32.partialorder %v1094_v44, 8.507059e+37  ;;  %v1097_v56 = vor.u32 1.1754944e-38, %v1096_v45 }
 0x278   : > { %v1826_v38 = vpop.eup %1825 }
 0x279   : > { %v1086_v39 = vmul.f32 %v1826_v38, %v1019_v37  ;;  %v1025_v40 = vpop.xlane.xlu0 %1024  ;;  %vm1091_vm3 = vweird.f32 %v1826_v38 }
 0x27a   : > { %v2459_v41 = vpop.xlane.xlu1 %1021  ;;  %1827 = vrcp.f32 %v1025_v40  ;;  %vm2462_vm5 = vmor %vm1090_vm4, %vm1091_vm3  ;;  %v1122_v58 = vand.u32 2147483647, %v1025_v40  ;;  %v1124_v62 = vand.u32 2147483648, %v1025_v40  ;;  %vm1118_vm8 = vweird.f32 %v1025_v40 }
 0x27b   : > { %v1087_v42 = vsub.f32 1.0, %v1086_v39  ;;  %1829 = vrcp.f32 %v2459_v41  ;;  %v1110_v60 = vand.u32 2147483648, %v2459_v41  ;;  %v1108_v1 = vand.u32 2147483647, %v2459_v41 }
 0x27c   : > { %vm1104_vm7 = vweird.f32 %v2459_v41  ;;  %vm2485_vm10 = vcmp.eq.f32.partialorder %v1122_v58, 8.507059e+37  ;;  %v1125_v11 = vor.u32 1.1754944e-38, %v1124_v62 }
 0x27d   : > { %v1088_v43 = vmul.f32 %v1826_v38, %v1087_v42  ;;  %v1111_v8 = vor.u32 1.1754944e-38, %v1110_v60  ;;  %vm2499_vm14 = vcmp.eq.f32.partialorder %v1108_v1, 8.507059e+37 }
 0x27f   : > { %v1089_v46 = vadd.f32 %v1826_v38, %v1088_v43 }
 0x280   : > { %v1828_v49 = vpop.eup %1827 }
 0x281   : > { %v2466_v51 = vpop.eup %1829  ;;  %v1093_v52 = vsel %vm2462_vm5, %v1826_v38, %v1089_v46  ;;  %v1114_v53 = vmul.f32 %v1828_v49, %v1025_v40  ;;  %v2470_v54 = vpop.xlane.xlu2 %1006  ;;  %vm1119_vm9 = vweird.f32 %v1828_v49 }
 0x282   : > { %v2472_v55 = vpop.xlane.xlu0 %1012  ;;  %v1100_v57 = vmul.f32 %v2466_v51, %v2459_v41  ;;  %1831 = vrcp.f32 %v2470_v54  ;;  %v2477_v59 = vpop.xlane.xlu1 %1027  ;;  %v1098_v63 = vsel %vm1095_vm6, %v1097_v56, %v1093_v52  ;;  %v1038_v6 = vand.u32 2147483647, %v2470_v54  ;;  %vm2492_vm11 = vmor %vm1118_vm8, %vm1119_vm9 }
 0x283   : > { %v1115_v61 = vsub.f32 1.0, %v1114_v53  ;;  %1833 = vrcp.f32 %v2477_v59  ;;  %v1040_v7 = vand.u32 2147483648, %v2470_v54  ;;  %v1145_v12 = vmul.f32 %v2427_v4, %v1098_v63 }
 0x284   : > { %v1101_v0 = vsub.f32 1.0, %v1100_v57  ;;  %1835 = vrcp.f32 %v2472_v55  ;;  %vm1034_vm12 = vweird.f32 %v2470_v54  ;;  %vm1132_vm13 = vweird.f32 %v2477_v59 }
 0x285   : > { %v1116_v2 = vmul.f32 %v1828_v49, %v1115_v61  ;;  %v1138_v15 = vand.u32 2147483648, %v2477_v59  ;;  %1691 = vmatmul.msk.f32.vlgmr.msra.gmra.mxu2 %vm956_vm2, %v1145_v12  ;;  %vm1105_vm15 = vweird.f32 %v2466_v51  ;;  %vm2513_vm3 = vcmp.eq.f32.partialorder %v1038_v6, 8.507059e+37 }
 0x286   : > { %v1102_v3 = vmul.f32 %v2466_v51, %v1101_v0  ;;  %v1041_v30 = vor.u32 1.1754944e-38, %v1040_v7  ;;  %v1066_v37 = vand.u32 2147483647, %v2472_v55  ;;  %v1068_v39 = vand.u32 2147483648, %v2472_v55  ;;  %vm1106_vm4 = vmor %vm1104_vm7, %vm1105_vm15 }
 0x287   : > { %v1117_v9 = vadd.f32 %v1828_v49, %v1116_v2  ;;  %v1136_v40 = vand.u32 2147483647, %v2477_v59  ;;  %v1139_v52 = vor.u32 1.1754944e-38, %v1138_v15  ;;  %vm1062_vm9 = vweird.f32 %v2472_v55 }
 0x288   : > { %v1832_v13 = vpop.eup %1831  ;;  %v1103_v24 = vadd.f32 %v2466_v51, %v1102_v3  ;;  %v1069_v57 = vor.u32 1.1754944e-38, %v1068_v39 }
 0x289   : > { %v1834_v19 = vpop.eup %1833  ;;  %v1121_v21 = vsel %vm2492_vm11, %v1828_v49, %v1117_v9  ;;  %v1030_v4 = vmul.f32 %v1832_v13, %v2470_v54  ;;  %v2507_v22 = vpop.xlane.xlu2 %1009  ;;  %vm1035_vm5 = vweird.f32 %v1832_v13 }
 0x28a   : > { %v2509_v23 = vpop.xlane.xlu0 %1015  ;;  %v1836_v26 = vpop.eup %1835  ;;  %v1128_v31 = vmul.f32 %v1834_v19, %v2477_v59  ;;  %1837 = vrcp.f32 %v2507_v22  ;;  %v1126_v32 = vsel %vm2485_vm10, %v1125_v11, %v1121_v21  ;;  %v1107_v44 = vsel %vm1106_vm4, %v2466_v51, %v1103_v24  ;;  %vm1036_vm7 = vmor %vm1034_vm12, %vm1035_vm5  ;;  %v491_v24 = vld [vmem:[#allocation11 + $0x30] sm:$0xff] }
 0x28b   : > { %v1031_v35 = vsub.f32 1.0, %v1030_v4  ;;  %v1058_v36 = vmul.f32 %v1836_v26, %v2472_v55  ;;  %1839 = vrcp.f32 %v2509_v23  ;;  %vm1063_vm6 = vweird.f32 %v1836_v26  ;;  %v486_v4 = vld [vmem:[#allocation11 + $0x8] sm:$0xff]  ;;  %1373 = vmatpush.msrb.mxu3 %v491_v24 }
 0x28c   : > { %v1129_v38 = vsub.f32 1.0, %v1128_v31  ;;  %v1112_v46 = vsel %vm2499_vm14, %v1111_v8, %v1107_v44  ;;  %v1147_v47 = vmul.f32 %v2431_v16, %v1126_v32  ;;  %vm1133_vm8 = vweird.f32 %v1834_v19  ;;  %vm1064_vm12 = vmor %vm1062_vm9, %vm1063_vm6  ;;  %1285 = vmatpush.msrb.mxu0 %v486_v4 }
 0x28d   : > { %v1032_v42 = vmul.f32 %v1832_v13, %v1031_v35  ;;  %v1059_v43 = vsub.f32 1.0, %v1058_v36  ;;  %v1146_v50 = vmul.f32 %v2433_v20, %v1112_v46  ;;  %vm2536_vm10 = vcmp.eq.f32.partialorder %v1066_v37, 8.507059e+37  ;;  %vm1134_vm11 = vmor %vm1132_vm13, %vm1133_vm8 }
 0x28e   : > { %v1130_v45 = vmul.f32 %v1834_v19, %v1129_v38  ;;  %1693 = vmatmul.msk.f32.vlgmr.msra.gmra.mxu3 %vm956_vm2, %v1147_v47  ;;  %v1054_v58 = vand.u32 2147483648, %v2507_v22  ;;  %vm1137_vm14 = vcmp.eq.f32.partialorder %v1136_v40, 8.507059e+37  ;;  %v1052_v2 = vand.u32 2147483647, %v2507_v22 }
 0x28f   : > { %v1033_v48 = vadd.f32 %v1832_v13, %v1032_v42  ;;  %v1060_v49 = vmul.f32 %v1836_v26, %v1059_v43  ;;  %1692 = vmatmul.msk.f32.gmra.mxu2 %vm956_vm2, %v1146_v50  ;;  %vm1048_vm15 = vweird.f32 %v2507_v22  ;;  %v1082_v8 = vand.u32 2147483648, %v2509_v23 }
 0x290   : > { %v1838_v41 = vpop.eup %1837  ;;  %v1131_v53 = vadd.f32 %v1834_v19, %v1130_v45  ;;  %v1080_v11 = vand.u32 2147483647, %v2509_v23  ;;  %v1055_v12 = vor.u32 1.1754944e-38, %v1054_v58  ;;  %vm1076_vm5 = vweird.f32 %v2509_v23 }
 0x291   : > { %v1037_v16 = vsel %vm1036_vm7, %v1832_v13, %v1033_v48  ;;  %v1061_v56 = vadd.f32 %v1836_v26, %v1060_v49  ;;  %v1044_v20 = vmul.f32 %v1838_v41, %v2507_v22  ;;  %v1840_v54 = vpop.eup %1839  ;;  %vm1049_vm13 = vweird.f32 %v1838_v41  ;;  %v488_v22 = vld [vmem:[#allocation11 + $0x18] sm:$0xff]  ;;  %v1806_v48 = vld [vmem:[%s2642_s6] ss:$0 sm:$0xff] }
 0x292   : > { %v1042_v55 = vsel %vm2513_vm3, %v1041_v30, %v1037_v16  ;;  %v1135_v60 = vsel %vm1134_vm11, %v1834_v19, %v1131_v53  ;;  %v1072_v63 = vmul.f32 %v1840_v54, %v2509_v23  ;;  %vm1077_vm3 = vweird.f32 %v1840_v54  ;;  %vm1050_vm4 = vmor %vm1048_vm15, %vm1049_vm13  ;;  %v489_v23 = vld [vmem:[#allocation11 + $0x20] sm:$0xff]  ;;  %1314 = vmatpush.msrb.mxu1 %v488_v22 }
 0x293   : > { %v1065_v61 = vsel %vm1064_vm12, %v1836_v26, %v1061_v56  ;;  %v1045_v62 = vsub.f32 1.0, %v1044_v20  ;;  %v1141_v0 = vmul.f32 %v2443_v28, %v1042_v55  ;;  %v1140_v1 = vsel %vm1137_vm14, %v1139_v52, %v1135_v60  ;;  %vm1078_vm8 = vmor %vm1076_vm5, %vm1077_vm3  ;;  %1344 = vmatpush.msrb.mxu2 %v489_v23  ;;  %v485_v26 = vld [vmem:[#allocation11] sm:$0xff] }
 0x294   : > { %v1070_v59 = vsel %vm2536_vm10, %v1069_v57, %v1065_v61  ;;  %v1073_v5 = vsub.f32 1.0, %v1072_v63  ;;  %v1148_v7 = vmul.f32 %v2441_v27, %v1140_v1  ;;  %vm1053_vm6 = vcmp.eq.f32.partialorder %v1052_v2, 8.507059e+37  ;;  %1286 = vmatpush.msrb.mxu0 %v485_v26  ;;  %1315 = vmatpush.msrb.mxu1 %v487_v29 }
 0x295   : > { %v1046_v3 = vmul.f32 %v1838_v41, %v1045_v62  ;;  %1687 = vmatmul.msk.f32.vlgmr.msra.gmra.mxu0 %vm956_vm2, %v1141_v0  ;;  %v1143_v6 = vmul.f32 %v2439_v25, %v1070_v59  ;;  %v1083_v13 = vor.u32 1.1754944e-38, %v1082_v8  ;;  %vm1081_vm7 = vcmp.eq.f32.partialorder %v1080_v11, 8.507059e+37 }
 0x296   : > { %v1074_v28 = vmul.f32 %v1840_v54, %v1073_v5  ;;  %1694 = vmatmul.msk.f32.gmra.mxu3 %vm956_vm2, %v1148_v7 }
 0x297   : > { %1689 = vmatmul.msk.f32.vlgmr.msra.gmra.mxu1 %vm956_vm2, %v1143_v6  ;;  %v1047_v9 = vadd.f32 %v1838_v41, %v1046_v3 }
 0x298   : > { %v1075_v27 = vadd.f32 %v1840_v54, %v1074_v28 }
 0x299   : > { %v1051_v25 = vsel %vm1050_vm4, %v1838_v41, %v1047_v9 }
 0x29a   : > { %v1056_v14 = vsel %vm1053_vm6, %v1055_v12, %v1051_v25  ;;  %v1079_v18 = vsel %vm1078_vm8, %v1840_v54, %v1075_v27 }
 0x29b   : > { %v1142_v15 = vmul.f32 %v2451_v33, %v1056_v14  ;;  %v1084_v19 = vsel %vm1081_vm7, %v1083_v13, %v1079_v18 }
 0x29c   : > { %v1144_v21 = vmul.f32 %v2453_v34, %v1084_v19 }
 0x29d   : > { %1688 = vmatmul.msk.f32.gmra.mxu0 %vm956_vm2, %v1142_v15 }
 0x29f   : > { %1690 = vmatmul.msk.f32.gmra.mxu1 %vm956_vm2, %v1144_v21 }
 0x308   : > { %v1230_v33 = vpop.f32.mrf.mxu2 }
 0x309   : > { %1699 = vmatmul.msk.f32.vlgmr.msrb.gmra.mxu2 %vm827_vm1, %v1230_v33  ;;  %v1807_v33 = vld [vmem:[%s2643_s7] ss:$0 sm:$0xff] }
 0x311   : > { %v1259_v31 = vpop.f32.mrf.mxu3 }
 0x312   : > { %v1172_v30 = vpop.f32.mrf.mxu0  ;;  %v1233_v34 = vpop.f32.mrf.mxu2  ;;  %1701 = vmatmul.msk.f32.vlgmr.msrb.gmra.mxu3 %vm827_vm1, %v1259_v31 }
 0x313   : > { %1695 = vmatmul.msk.f32.vlgmr.msrb.gmra.mxu0 %vm827_vm1, %v1172_v30  ;;  %1700 = vmatmul.msk.f32.gmra.mxu2 %vm827_vm1, %v1233_v34  ;;  %v1808_v34 = vld [vmem:[%s2644_s8] ss:$0 sm:$0xff] }
 0x314   : > { %v1201_v32 = vpop.f32.mrf.mxu1 }
 0x315   : > { %1697 = vmatmul.msk.f32.vlgmr.msrb.gmra.mxu1 %vm827_vm1, %v1201_v32 }
 0x319   : > { %v1262_v36 = vpop.f32.mrf.mxu3 }
 0x31a   : > { %v1175_v35 = vpop.f32.mrf.mxu0  ;;  %1702 = vmatmul.msk.f32.gmra.mxu3 %vm827_vm1, %v1262_v36 }
 0x31b   : > { %1696 = vmatmul.msk.f32.gmra.mxu0 %vm827_vm1, %v1175_v35 }
 0x31c   : > { %v1204_v37 = vpop.f32.mrf.mxu1 }
 0x31d   : > { %1698 = vmatmul.msk.f32.gmra.mxu1 %vm827_vm1, %v1204_v37 }
 0x38c   : > { %v1346_v38 = vpop.f32.mrf.mxu2 }
 0x38d   : > { %v1384_v45 = vsel %vm493_vm0, %v1346_v38, 0.0 }
 0x390   : > { %v1288_v39 = vpop.f32.mrf.mxu0 }
 0x391   : > { %v1381_v40 = vsel %vm493_vm0, %v1288_v39, 0.0 }
 0x392   : > { %v1317_v42 = vpop.f32.mrf.mxu1 }
 0x393   : > { %v1382_v43 = vsel %vm493_vm0, %v1317_v42, 0.0 }
 0x394   : > { %v1383_v44 = vadd.f32 %v1382_v43, %v1381_v40 }
 0x395   : > { %v1375_v47 = vpop.f32.mrf.mxu3 }
 0x396   : > { %v1385_v46 = vadd.f32 %v1384_v45, %v1383_v44  ;;  %v1386_v49 = vsel %vm493_vm0, %v1375_v47, 0.0  ;;  %v1349_v51 = vpop.f32.mrf.mxu2 }
 0x397   : > { %v1391_v20 = vsel %vm493_vm0, %v1349_v51, 0.0 }
 0x398   : > { %v1291_v50 = vpop.f32.mrf.mxu0  ;;  %v1387_v41 = vadd.f32 %v1386_v49, %v1385_v46 }
 0x399   : > { %v1388_v52 = vsel %vm493_vm0, %v1291_v50, 0.0 }
 0x39a   : > { %v1320_v53 = vpop.f32.mrf.mxu1  ;;  %v1399_v16 = vadd.f32 %v1806_v48, %v1387_v41 }
 0x39b   : > { %v1389_v56 = vsel %vm493_vm0, %v1320_v53, 0.0 }
 0x39c   : > { %v1390_v57 = vadd.f32 %v1389_v56, %v1388_v52  ;;  %v1401_v54 = vsel %vm493_vm0, %v1399_v16, 0.0  ;;  %v1407_v55 = vmul.f32 %v1399_v16, %v1399_v16 }
 0x39d   : > { %1402 = vadd.xlane.f32.xlu1 %v1401_v54  ;;  %v1378_v60 = vpop.f32.mrf.mxu3 }
 0x39e   : > { %v1392_v58 = vadd.f32 %v1391_v20, %v1390_v57  ;;  %v1409_v61 = vsel %vm493_vm0, %v1407_v55, 0.0  ;;  %v1393_v62 = vsel %vm493_vm0, %v1378_v60, 0.0 }
 0x39f   : > { %1410 = vadd.xlane.f32.xlu0 %v1409_v61 }
 0x3a0   : > { %v1394_v63 = vadd.f32 %v1393_v62, %v1392_v58 }
 0x3a2   : > { %v1400_v0 = vadd.f32 %v1806_v48, %v1394_v63 }
 0x3a4   : > { %v1404_v59 = vsel %vm493_vm0, %v1400_v0, 0.0  ;;  %v1408_v1 = vmul.f32 %v1400_v0, %v1400_v0 }
 0x3a5   : > { %1405 = vadd.xlane.f32.xlu2 %v1404_v59 }
 0x3a6   : > { %v1412_v2 = vsel %vm493_vm0, %v1408_v1, 0.0 }
 0x3a7   : > { %1413 = vadd.xlane.f32.xlu1 %v1412_v2 }
 0x410   : > { %v1403_v3 = vpop.xlane.xlu1 %1402 }
 0x411   : > { %v1415_v5 = vmul.f32 0.015625, %v1403_v3 }
 0x412   : > { %v1411_v6 = vpop.xlane.xlu0 %1410 }
 0x413   : > { %v1419_v7 = vmul.f32 %v1415_v5, %v1415_v5  ;;  %v1417_v8 = vmul.f32 0.015625, %v1411_v6  ;;  %v1423_v29 = vsub.f32 %v1399_v16, %v1415_v5 }
 0x415   : > { %v1421_v28 = vsub.f32 %v1417_v8, %v1419_v7 }
 0x417   : > { %v1425_v9 = vadd.f32 1e-05, %v1421_v28 }
 0x418   : > { %v1406_v11 = vpop.xlane.xlu2 %1405 }
 0x419   : > { %1841 = vrsqrt.f32 %v1425_v9  ;;  %v1416_v12 = vmul.f32 0.015625, %v1406_v11  ;;  %vm1433_vm2 = vweird.f32 %v1425_v9 }
 0x41a   : > { %v1414_v25 = vpop.xlane.xlu1 %1413 }
 0x41b   : > { %v1420_v27 = vmul.f32 %v1416_v12, %v1416_v12  ;;  %v1418_v13 = vmul.f32 0.015625, %v1414_v25  ;;  %v1424_v42 = vsub.f32 %v1400_v0, %v1416_v12 }
 0x41d   : > { %v1422_v14 = vsub.f32 %v1418_v13, %v1420_v27 }
 0x41f   : > { %v1842_v15 = vpop.eup %1841  ;;  %v1426_v18 = vadd.f32 1e-05, %v1422_v14 }
 0x420   : > { %v1428_v19 = vmul.f32 %v1842_v15, %v1425_v9  ;;  %vm1434_vm1 = vweird.f32 %v1842_v15 }
 0x421   : > { %1843 = vrsqrt.f32 %v1426_v18  ;;  %vm1435_vm9 = vmor %vm1433_vm2, %vm1434_vm1  ;;  %vm1443_vm11 = vweird.f32 %v1426_v18 }
 0x422   : > { %v1429_v21 = vmul.f32 %v1842_v15, %v1428_v19 }
 0x424   : > { %v1430_v4 = vmul.f32 0.5, %v1429_v21 }
 0x426   : > { %v1431_v22 = vsub.f32 1.5, %v1430_v4 }
 0x427   : > { %v1844_v23 = vpop.eup %1843 }
 0x428   : > { %v1432_v24 = vmul.f32 %v1842_v15, %v1431_v22  ;;  %v1438_v26 = vmul.f32 %v1844_v23, %v1426_v18  ;;  %vm1444_vm10 = vweird.f32 %v1844_v23 }
 0x429   : > { %vm1445_vm12 = vmor %vm1443_vm11, %vm1444_vm10 }
 0x42a   : > { %v1436_v30 = vsel %vm1435_vm9, %v1842_v15, %v1432_v24  ;;  %v1439_v31 = vmul.f32 %v1844_v23, %v1438_v26 }
 0x42b   : > { %v1447_v32 = vmul.f32 %v1436_v30, %v1423_v29 }
 0x42c   : > { %v1440_v35 = vmul.f32 0.5, %v1439_v31 }
 0x42d   : > { %v1453_v36 = vmul.f32 %v1807_v33, %v1447_v32 }
 0x42e   : > { %v1441_v37 = vsub.f32 1.5, %v1440_v35 }
 0x42f   : > { %v1459_v38 = vadd.f32 %v1808_v34, %v1453_v36 }
 0x430   : > { %v1442_v39 = vmul.f32 %v1844_v23, %v1441_v37 }
 0x431   : > { %v1461_v40 = vadd.f32 %v1459_v38, %v2359_v10 }
 0x432   : > { %v1446_v43 = vsel %vm1445_vm12, %v1844_v23, %v1442_v39 }
 0x433   : > { %v1448_v44 = vmul.f32 %v1446_v43, %v1424_v42  ;;  %1463 = vst.msk [vmem:[%s457_s14] sm:$0xff] %vm493_vm0, %v1461_v40 }
 0x435   : > { %v1454_v45 = vmul.f32 %v1807_v33, %v1448_v44 }
 0x437   : > { %v1460_v46 = vadd.f32 %v1808_v34, %v1454_v45 }
 0x439   : > { %v1462_v10 = vadd.f32 %v1460_v46, %v2378_v17 }
 0x43b   : > { %1464 = vst.msk [vmem:[%s457_s14 + $0x8] sm:$0xff] %vm493_vm0, %v1462_v10 }
 0x43c   : > { %2052 = shalt.err (!%p2049_p9)
}
 0x43d   : > { %s2115_s2 = smov 128   ;;  %s2116_s25 = smov 8  }
 0x43e   : > { %1730 = dma.vmem_to_hbm [thread:$0]  (%p2263_p3), %s1479_s13, 256, %s1481_s11, %s1466_s16, %s2115_s2, %s2115_s2, %s2116_s25  }
 0x43f PF: > { %s1495_s5 = sand.u32 1, %s2095_s30   ;;  %p2685_p12 = scmp.ge.s32.totalorder %s2107_s12, 2 }
 0x440   : > { %s1496_s23 = scalar_lea.sflag [#allocation4], %s1495_s5 }
 0x441   : > { %p1753_p13 = pnand %p2685_p12, %p2202_p6 }
 0x443   : > { %p1754_p0 = pneg %p1753_p13 }
 0x445   : > { %2090 = dma.done.wait (%p1754_p0), %s1496_s23, 256  }
 0x446   : > { %2092 = vsyncadd (%p1754_p0), %s1496_s23, 4294967040  ;;  %s2686_s12 = sld [smem:[#allocation22_spill]]  ;;  %s2689_s30 = smov %s2099_s10 }
 0x447   : > { %s2687_s29 = sld [smem:[#allocation20_spill]] }
 0x448   : > { %s2688_s11 = sld [smem:[#allocation23_spill]] }
 0x44c   : > { %p27_p5 = scmp.ge.s32.totalorder %s2686_s12, 4  }
 0x44d   : > { %s2690_s10 = smov %s2687_s29 }
 0x44e   :  { %29 = sbr.rel (!%p27_p5) target bundleno = 14 (0xe), region = 130 }
 0x453   :  { %1502 = vsyncpa [#allocation3], 1 }
 0x454   :  { %1504 = vsyncpa [#allocation3 + $0x1], 1 }
 0x455   :  { %1505 = vsyncpa [#allocation6], 1 }
 0x456   :  { %1507 = vsyncpa [#allocation6 + $0x1], 1 }
 0x457   :  { %1508 = vsyncpa [#allocation9], 1 }
 0x458   :  { %1509 = vsyncpa [#allocation12], 1 }
 0x459   :  { %1510 = vsyncpa [#allocation4], 1 }
 0x45a   :  { %1512 = vsyncpa [#allocation4 + $0x1], 1 }

// kernel: tpu_custom_call.1
= control target key start
LH: loop header
LB: loop body
LE: loop exit
PB: predicated region body
PF: predicated region fallthrough
CT: control target
= control target key end

     0   :  { %s2636_s0 = inlined_call_operand.hbm [shape: f32[2,16,64], index: 0, kind: input, shape index: {}]   ;;  %s2637_s1 = inlined_call_operand.hbm [shape: f32[2,8,64], index: 1, kind: input, shape index: {}]   ;;  %s2638_s2 = inlined_call_operand.hbm [shape: f32[4,16,64], index: 2, kind: input, shape index: {}]   ;;  %s2639_s3 = inlined_call_operand.hbm [shape: f32[4,16,64], index: 3, kind: input, shape index: {}]   ;;  %s2640_s4 = inlined_call_operand.hbm [shape: f32[4,16,64], index: 4, kind: input, shape index: {}]   ;;  %s2641_s5 = inlined_call_operand.hbm [shape: f32[4,16,64], index: 5, kind: input, shape index: {}]   ;;  %s2642_s6 = inlined_call_operand.vmem [shape: f32[1,64], index: 6, kind: input, shape index: {}]   ;;  %s2643_s7 = inlined_call_operand.vmem [shape: f32[1,64], index: 7, kind: input, shape index: {}]   ;;  %s2644_s8 = inlined_call_operand.vmem [shape: f32[1,64], index: 8, kind: input, shape index: {}]   ;;  %s2645_s9 = inlined_call_operand.hbm [shape: f32[2,16,64], index: 9, kind: output, shape index: {}]  }
   0x1   :  { %2652 = sst [smem:[#allocation24_spill]] %s2638_s2 }
   0x2   :  { %2653 = sst [smem:[#allocation25_spill]] %s2639_s3 }
   0x3   :  { %2654 = sst [smem:[#allocation26_spill]] %s2640_s4 }
   0x4   :  { %2655 = sst [smem:[#allocation27_spill]] %s2641_s5 }
   0x5   :  { %14 = vsyncpa [#allocation3], 0 }
   0x6   :  { %16 = vsyncpa [#allocation3 + $0x1], 0 }
   0x7   :  { %17 = vsyncpa [#allocation6], 0 }
   0x8   :  { %19 = vsyncpa [#allocation6 + $0x1], 0 }
   0x9   :  { %20 = vsyncpa [#allocation9], 0 }
   0xa   :  { %21 = vsyncpa [#allocation12], 0 }
   0xb   :  { %22 = vsyncpa [#allocation4], 0 }
   0xc   :  { %24 = vsyncpa [#allocation4 + $0x1], 0  ;;  %s2167_s30 = smov 0   ;;  %s2169_s10 = smov 0  }
   0xd   :  { %s2171_s11 = smov 0   ;;  %s2173_s12 = smov 0  }
   0xe LB: > { %2656 = sst [smem:[#allocation20_spill]] %s2103_s11  ;;  %s2188_s13 = sadd.s32 4294967295, %s2107_s12   ;;  %s2107_s12 = sphi %s2173_s12, %s2686_s12   ;;  %s2103_s11 = sphi %s2171_s11, %s2688_s11   ;;  %s2099_s10 = sphi %s2169_s10, %s2690_s10   ;;  %s2095_s30 = sphi %s2167_s30, %s2689_s30  }
   0xf   : > { %s1615_s14 = sadd.s32 4294967294, %s2107_s12   ;;  %p50_p0 = scmp.ne.s32.totalorder %s2099_s10, %s2095_s30 }
  0x10   : > { %p51_p1 = scmp.eq.s32.totalorder %s2188_s13, 0  ;;  %p247_p2 = scmp.eq.s32.totalorder %s2188_s13, 1 }
  0x11   : > { %p253_p3 = scmp.eq.s32.totalorder %s1615_s14, 1  ;;  %p1616_p5 = scmp.ge.s32.totalorder %s2107_s12, 1 }
  0x12   : > { %p2197_p4 = por %p51_p1, %p50_p0  ;;  %p260_p7 = scmp.lt.s32.totalorder %s2107_s12, 3 }
  0x13   : > { %p2202_p6 = por %p253_p3, %p50_p0  ;;  %s2660_s2 = sld [smem:[#allocation24_spill]] }
  0x14   : > { %p2210_p8 = pnand %p1616_p5, %p260_p7  ;;  %s2109_s21 = smov [#allocation7]  }
  0x15   : > { %s2658_s16 = scalar_select %p2202_p6, 1, 0 }
  0x16   : > { %p1732_p9 = pneg %p2210_p8  ;;  %s273_s22 = sshll.u32 %s2109_s21, 4  ;;  %s274_s22 = int_to_ptr.vmem [resolvable:$true] %s273_s22 }
  0x17   : > { %2659 = sst [smem:[#allocation21_spill]] %s2658_s16  ;;  %s2646_s27 = smov 128  }
  0x18   : > { %p2218_p10 = pnand %p1732_p9, %p51_p1  ;;  %s2663_s3 = sld [smem:[#allocation25_spill]] }
  0x19   : > { %s271_s19 = sshll.u32 %s2660_s2, 4  ;;  %s2647_s28 = smov 8   ;;  %s272_s19 = int_to_ptr.hbm [resolvable:$true] %s271_s19 }
  0x1a   : > { %1735 = dma.hbm_to_vmem [thread:$0]  (!%p2218_p10), %s272_s19, 1024, %s274_s22, [#allocation6], %s2646_s27, %s2646_s27, %s2647_s28  }
  0x1b   : > { %s2112_s29 = smov [#allocation8]   ;;  %s2664_s4 = sld [smem:[#allocation26_spill]] }
  0x1c   : > { %s287_s14 = sshll.u32 %s2112_s29, 4  ;;  %s2665_s5 = sld [smem:[#allocation27_spill]]  ;;  %s288_s14 = int_to_ptr.vmem [resolvable:$true] %s287_s14 }
  0x1d   : > { %s2113_s25 = smov [#allocation10]   ;;  %s2114_s17 = smov [#allocation11]  }
  0x1e   : > { %s285_s26 = sshll.u32 %s2663_s3, 4  ;;  %s301_s29 = sshll.u32 %s2113_s25, 4  ;;  %s286_s26 = int_to_ptr.hbm [resolvable:$true] %s285_s26  ;;  %s302_s29 = int_to_ptr.vmem [resolvable:$true] %s301_s29 }
  0x1f   : > { %1738 = dma.hbm_to_vmem [thread:$0]  (!%p2218_p10), %s286_s26, 1024, %s288_s14, [#allocation9], %s2646_s27, %s2646_s27, %s2647_s28  }
  0x20   : > { %s315_s26 = sshll.u32 %s2114_s17, 4  ;;  %s2253_s14 = sadd.s32 1, %s2107_s12   ;;  %s316_s26 = int_to_ptr.vmem [resolvable:$true] %s315_s26 }
  0x21   : > { %s299_s21 = sshll.u32 %s2664_s4, 4  ;;  %2666 = sst [smem:[#allocation22_spill]] %s2253_s14  ;;  %s300_s21 = int_to_ptr.hbm [resolvable:$true] %s299_s21 }
  0x22   : > { %s313_s24 = sshll.u32 %s2665_s5, 4  ;;  %s37_s18 = sadd.s32 1, %s2103_s11  ;;  %s314_s24 = int_to_ptr.hbm [resolvable:$true] %s313_s24 }
  0x23   : > { %1741 = dma.hbm_to_vmem [thread:$0]  (!%p2218_p10), %s300_s21, 1024, %s302_s29, [#allocation9], %s2646_s27, %s2646_s27, %s2647_s28  }
  0x24   : > { %1744 = dma.hbm_to_vmem [thread:$0]  (!%p2218_p10), %s314_s24, 1024, %s316_s26, [#allocation12], %s2646_s27, %s2646_s27, %s2647_s28  }
  0x25   : > { %s34_s19 = ssub.s32 %s2107_s12, %s2253_s14  ;;  %p44_p12 = scmp.ne.s32.totalorder %s2103_s11, %s2099_s10 }
  0x26   : > { %p35_p13 = scmp.eq.s32.totalorder %s34_s19, 0  ;;  %p45_p0 = scmp.eq.s32.totalorder %s2107_s12, 0 }
  0x27   : > { %p2263_p3 = por %p247_p2, %p44_p12  ;;  %p1760_p5 = scmp.lt.s32.totalorder %s2107_s12, 2 }
  0x28   : > { %s2269_s23 = scalar_select %p35_p13, %s2103_s11, %s37_s18  }
  0x29   : > { %p46_p7 = por %p45_p0, %p44_p12  ;;  %s2272_s22 = sand.u32 1, %s2103_s11  }
  0x2a   : > { %2668 = sst [smem:[#allocation23_spill]] %s2269_s23  ;;  %s1622_s24 = sshll.u32 %s2272_s22, 4 }
  0x2b   : > { %s1708_s25 = sshll.u32 %s2107_s12, 4  ;;  %s342_s19 = scalar_lea.vmem [#allocation2], %s1622_s24 }
  0x2c   : > { %s347_s26 = scalar_lea.hbm %s2636_s0, %s1708_s25  ;;  %s350_s27 = sshll.u32 %s342_s19, 4  ;;  %s351_s27 = int_to_ptr.vmem [resolvable:$true] %s350_s27 }
  0x2d   : > { %s348_s28 = sshll.u32 %s347_s26, 4  ;;  %p2279_p2 = pnand %p1760_p5, %p46_p7  ;;  %s349_s28 = int_to_ptr.hbm [resolvable:$true] %s348_s28 }
  0x2e   : > { %s360_s2 = sand.u32 1, %s2107_s12   ;;  %s1625_s3 = sshll.u32 %s2272_s22, 3 }
  0x2f   : > { %s339_s4 = scalar_lea.sflag [#allocation3], %s2272_s22  ;;  %s1965_s5 = sshra.s32 %s349_s28, 4  ;;  %s1966_s5 = int_to_ptr.hbm [resolvable:$true] %s1965_s5 }
  0x30   : > { %s1967_s23 = scalar_lea.hbm %s1966_s5, 16  ;;  %p1969_p10 = pneg %p2279_p2 }
  0x31   : > { %p1968_p9 = scmp.ne.s32.totalorder %s1966_s5, %s1967_s23  ;;  %s1972_s29 = scalar_lea.hbm %s2636_s0, 32 }
  0x32   : > { %p1973_p0 = scmp.lt.s32.totalorder %s1966_s5, %s2636_s0  ;;  %p1974_p5 = scmp.lt.s32.totalorder %s1972_s29, %s1967_s23 }
  0x33   : > { %p1970_p12 = pnand %p1969_p10, %p1968_p9 }
  0x34   : > { %p1975_p7 = por %p1974_p5, %p1973_p0 }
  0x35   : > { %p1971_p13 = pneg %p1970_p12 }
  0x37   : > { %p1976_p11 = pnand %p1975_p7, %p1971_p13 }
  0x39   : > { %1979 = shalt.err (!%p1976_p11)
}
  0x3a   : > { %s2670_s22 = smov 8   ;;  %s2671_s19 = smov 128  }
  0x3b   : > { %1748 = dma.hbm_to_vmem [thread:$0]  (!%p2279_p2), %s349_s28, 256, %s351_s27, %s339_s4, %s2671_s19, %s2671_s19, %s2670_s22  }
  0x3c   : > { %s1626_s11 = sshll.u32 %s2107_s12, 3  ;;  %s364_s16 = scalar_lea.vmem [#allocation5], %s1625_s3 }
  0x3d   : > { %s368_s25 = scalar_lea.hbm %s2637_s1, %s1626_s11  ;;  %s372_s17 = sshll.u32 %s364_s16, 4  ;;  %s373_s17 = int_to_ptr.vmem [resolvable:$true] %s372_s17 }
  0x3e   : > { %s370_s5 = sshll.u32 %s368_s25, 4  ;;  %s361_s23 = scalar_lea.sflag [#allocation6], %s360_s2  ;;  %s371_s5 = int_to_ptr.hbm [resolvable:$true] %s370_s5 }
  0x3f   : > { %s1995_s29 = sshra.s32 %s371_s5, 4  ;;  %s2002_s28 = scalar_lea.hbm %s2637_s1, 16  ;;  %s1996_s29 = int_to_ptr.hbm [resolvable:$true] %s1995_s29 }
  0x40   : > { %s1997_s26 = scalar_lea.hbm %s1996_s29, 8  ;;  %p2003_p13 = scmp.lt.s32.totalorder %s1996_s29, %s2637_s1 }
  0x41   : > { %p1998_p11 = scmp.ne.s32.totalorder %s1996_s29, %s1997_s26  ;;  %p2004_p0 = scmp.lt.s32.totalorder %s2002_s28, %s1997_s26 }
  0x43   : > { %p2000_p9 = pnand %p1998_p11, %p1969_p10  ;;  %p2005_p5 = por %p2004_p0, %p2003_p13 }
  0x45   : > { %p2001_p12 = pneg %p2000_p9 }
  0x47   : > { %p2006_p7 = pnand %p2005_p5, %p2001_p12 }
  0x49   : > { %2009 = shalt.err (!%p2006_p7)
}
  0x4a   : > { %1751 = dma.hbm_to_vmem [thread:$0]  (!%p2279_p2), %s371_s5, 128, %s373_s17, %s361_s23  }
  0x4b   : > { %381 = sbr.rel (%p2210_p8) target bundleno = 1087 (0x43f), region = 56  ;;  %s2320_s2 = sand.u32 (!%p2210_p8), 1, %s2099_s10  }
  0x4c   : > { %s1628_s3 = sshll.u32 (!%p2210_p8), %s2320_s2, 4  ;;  %s384_s16 = scalar_lea.sflag (!%p2210_p8), [#allocation3], %s2320_s2 }
  0x4d   : > { %s2326_s22 = scalar_lea.vmem (!%p2210_p8), [#allocation2], %s1628_s3 }
  0x50   : > { %2070 = dma.done.wait (%p2197_p4), %s384_s16, 256  }
  0x51   : > { %2072 = vsyncadd (%p2197_p4), %s384_s16, 4294967040  ;;  %s393_s20 = sand.u32 1, %s2188_s13   ;;  %s1629_s18 = sshll.u32 %s2320_s2, 3 }
  0x52   : > { %s394_s19 = scalar_lea.sflag [#allocation6], %s393_s20  ;;  %s2334_s24 = scalar_lea.vmem [#allocation5], %s1629_s18 }
  0x53   : > { %2074 = dma.done.wait (%p2197_p4), %s394_s19, 128  }
  0x54   : > { %2076 = vsyncadd (%p2197_p4), %s394_s19, 4294967168 }
  0x55   : > { %2078 = dma.done.wait (%p51_p1), [#allocation6], 1024  }
  0x56   : > { %2080 = vsyncadd (%p51_p1), [#allocation6], 4294966272 }
  0x57   : > { %2082 = dma.done.wait (%p51_p1), [#allocation9], 2048  }
  0x58   : > { %2084 = vsyncadd (%p51_p1), [#allocation9], 4294965248 }
  0x59   : > { %2086 = dma.done.wait (%p51_p1), [#allocation12], 1024  }
  0x5a   : > { %2088 = vsyncadd (%p51_p1), [#allocation12], 4294966272  ;;  %vm493_vm0 = vcmask 523264   ;;  %v464_v0 = vld [vmem:[#allocation7 + $0x18] sm:$0xff]  ;;  %v466_v1 = vld [vmem:[#allocation7 + $0x28] sm:$0xff]  ;;  %vm827_vm1 = vcmask 130048  }
  0x5b   : > { %v468_v2 = vld [vmem:[#allocation7 + $0x38] sm:$0xff]  ;;  %1639 = vmatpush.xpose.msk.msra.mxu1 %vm493_vm0, %v464_v0  ;;  %1643 = vmatpush.xpose.msk.msra.mxu2 %vm493_vm0, %v466_v1  ;;  %v463_v3 = vld [vmem:[#allocation7 + $0x10] sm:$0xff]  ;;  %v465_v4 = vld [vmem:[#allocation7 + $0x20] sm:$0xff]  ;;  %vm956_vm2 = vcmask 64512   ;;  %s1709_s26 = sshll.u32 %s2188_s13, 4  ;;  %s457_s14 = scalar_lea.vmem [#allocation13], %s1628_s3 }
  0x5c   : > { %1647 = vmatpush.xpose.msk.msra.mxu3 %vm493_vm0, %v468_v2  ;;  %v462_v5 = vld [vmem:[#allocation7 + $0x8] sm:$0xff]  ;;  %v467_v6 = vld [vmem:[#allocation7 + $0x30] sm:$0xff]  ;;  %v461_v8 = vld [vmem:[#allocation7] sm:$0xff]  ;;  %s1477_s28 = scalar_lea.hbm %s2645_s9, %s1709_s26  ;;  %s1478_s13 = sshll.u32 %s457_s14, 4  ;;  %s1479_s13 = int_to_ptr.vmem [resolvable:$true] %s1478_s13 }
  0x5d   : > { %1635 = vmatpush.xpose.msk.msra.mxu0 %vm493_vm0, %v462_v5  ;;  %v474_v7 = vld [vmem:[#allocation8 + $0x28] sm:$0xff]  ;;  %v472_v9 = vld [vmem:[#allocation8 + $0x18] sm:$0xff]  ;;  %v2359_v10 = vld [vmem:[%s2326_s22] sm:$0xff]  ;;  %s1480_s11 = sshll.u32 %s1477_s28, 4  ;;  %s1466_s16 = scalar_lea.sflag [#allocation4], %s2320_s2  ;;  %s1481_s11 = int_to_ptr.hbm [resolvable:$true] %s1480_s11 }
  0x5e   : > { %v470_v11 = vld [vmem:[#allocation8 + $0x8] sm:$0xff]  ;;  %v476_v12 = vld [vmem:[#allocation8 + $0x38] sm:$0xff]  ;;  %v471_v13 = vld [vmem:[#allocation8 + $0x10] sm:$0xff]  ;;  %s2045_s19 = scalar_lea.hbm %s2645_s9, 32 }
  0x5f   : > { %1640 = vmatpush.xpose.msk.msra.mxu1 %vm493_vm0, %v463_v3  ;;  %1644 = vmatpush.xpose.msk.msra.mxu2 %vm493_vm0, %v465_v4  ;;  %v473_v14 = vld [vmem:[#allocation8 + $0x20] sm:$0xff]  ;;  %v475_v16 = vld [vmem:[#allocation8 + $0x30] sm:$0xff]  ;;  %v2378_v17 = vld [vmem:[%s2326_s22 + $0x8] sm:$0xff]  ;;  %s2039_s22 = sshra.s32 %s1481_s11, 4  ;;  %s2040_s22 = int_to_ptr.hbm [resolvable:$true] %s2039_s22 }
  0x60   : > { %1648 = vmatpush.xpose.msk.msra.mxu3 %vm493_vm0, %v467_v6  ;;  %v469_v15 = vld [vmem:[#allocation8] sm:$0xff]  ;;  %v460_v18 = vld [vmem:[%s2334_s24] sm:$0xff]  ;;  %v482_v21 = vld [vmem:[#allocation10 + $0x28] sm:$0xff]  ;;  %s2041_s20 = scalar_lea.hbm %s2040_s22, 16  ;;  %p2046_p2 = scmp.lt.s32.totalorder %s2040_s22, %s2645_s9 }
  0x61   : > { %1636 = vmatpush.xpose.msk.msra.mxu0 %vm493_vm0, %v461_v8  ;;  %v480_v19 = vld [vmem:[#allocation10 + $0x18] sm:$0xff]  ;;  %v479_v20 = vld [vmem:[#allocation10 + $0x10] sm:$0xff]  ;;  %v478_v23 = vld [vmem:[#allocation10 + $0x8] sm:$0xff]  ;;  %p2042_p1 = scmp.ne.s32.totalorder %s2040_s22, %s2041_s20  ;;  %p2047_p10 = scmp.lt.s32.totalorder %s2045_s19, %s2041_s20 }
  0x62   : > { %1641 = vmatmul.msk.f32.vlgmr.msra.gmra.mxu1 %vm493_vm0, %v2359_v10  ;;  %1645 = vmatmul.msk.f32.vlgmr.msra.gmra.mxu2 %vm493_vm0, %v2359_v10  ;;  %v484_v22 = vld [vmem:[#allocation10 + $0x38] sm:$0xff]  ;;  %v481_v24 = vld [vmem:[#allocation10 + $0x20] sm:$0xff]  ;;  %v483_v25 = vld [vmem:[#allocation10 + $0x30] sm:$0xff] }
  0x63   : > { %1657 = vmatpush.xpose.msk.msrb.mxu2 %vm493_vm0, %v474_v7  ;;  %1654 = vmatpush.xpose.msk.msrb.mxu1 %vm493_vm0, %v472_v9  ;;  %v477_v26 = vld [vmem:[#allocation10] sm:$0xff]  ;;  %p2043_p4 = pnand %p2042_p1, %p2263_p3  ;;  %p2048_p11 = por %p2047_p10, %p2046_p2 }
  0x64   : > { %1649 = vmatmul.msk.f32.vlgmr.msra.gmra.mxu3 %vm493_vm0, %v2359_v10  ;;  %1637 = vmatmul.msk.f32.vlgmr.msra.gmra.mxu0 %vm493_vm0, %v2359_v10 }
  0x65   : > { %1651 = vmatpush.xpose.msk.msrb.mxu0 %vm493_vm0, %v470_v11  ;;  %1660 = vmatpush.xpose.msk.msrb.mxu3 %vm493_vm0, %v476_v12  ;;  %p2044_p8 = pneg %p2043_p4 }
  0x67   : > { %1655 = vmatpush.xpose.msk.msrb.mxu1 %vm493_vm0, %v471_v13  ;;  %1658 = vmatpush.xpose.msk.msrb.mxu2 %vm493_vm0, %v473_v14  ;;  %p2049_p9 = pnand %p2048_p11, %p2044_p8 }
  0x69   : > { %1652 = vmatpush.xpose.msk.msrb.mxu0 %vm493_vm0, %v469_v15  ;;  %1661 = vmatpush.xpose.msk.msrb.mxu3 %vm493_vm0, %v475_v16 }
  0x6a   : > { %1642 = vmatmul.msk.f32.gmra.mxu1 %vm493_vm0, %v2378_v17  ;;  %1646 = vmatmul.msk.f32.gmra.mxu2 %vm493_vm0, %v2378_v17 }
  0x6b   : > { %1666 = vmatpush.xpose.msk.msra.mxu1 %vm493_vm0, %v480_v19  ;;  %1669 = vmatpush.xpose.msk.msra.mxu2 %vm493_vm0, %v482_v21 }
  0x6c   : > { %1650 = vmatmul.msk.f32.gmra.mxu3 %vm493_vm0, %v2378_v17  ;;  %1638 = vmatmul.msk.f32.gmra.mxu0 %vm493_vm0, %v2378_v17 }
  0x6d   : > { %1672 = vmatpush.xpose.msk.msra.mxu3 %vm493_vm0, %v484_v22  ;;  %1663 = vmatpush.xpose.msk.msra.mxu0 %vm493_vm0, %v478_v23 }
  0x6f   : > { %1667 = vmatpush.xpose.msk.msra.mxu1 %vm493_vm0, %v479_v20  ;;  %1670 = vmatpush.xpose.msk.msra.mxu2 %vm493_vm0, %v481_v24 }
  0x71   : > { %1673 = vmatpush.xpose.msk.msra.mxu3 %vm493_vm0, %v483_v25  ;;  %1664 = vmatpush.xpose.msk.msra.mxu0 %vm493_vm0, %v477_v26 }
  0x72   : > { %1656 = vmatmul.msk.f32.vlgmr.msrb.gmra.mxu1 %vm493_vm0, %v460_v18  ;;  %1659 = vmatmul.msk.f32.vlgmr.msrb.gmra.mxu2 %vm493_vm0, %v460_v18 }
  0x74   : > { %1662 = vmatmul.msk.f32.vlgmr.msrb.gmra.mxu3 %vm493_vm0, %v460_v18  ;;  %1653 = vmatmul.msk.f32.vlgmr.msrb.gmra.mxu0 %vm493_vm0, %v460_v18 }
  0x7a   : > { %1668 = vmatmul.msk.f32.vlgmr.msra.gmra.mxu1 %vm493_vm0, %v460_v18  ;;  %1671 = vmatmul.msk.f32.vlgmr.msra.gmra.mxu2 %vm493_vm0, %v460_v18 }
  0x7c   : > { %1674 = vmatmul.msk.f32.vlgmr.msra.gmra.mxu3 %vm493_vm0, %v460_v18  ;;  %1665 = vmatmul.msk.f32.vlgmr.msra.gmra.mxu0 %vm493_vm0, %v460_v18 }
  0xdf   : > { %v552_v27 = vpop.f32.mrf.mxu1 }
  0xe1   : > { %v523_v28 = vpop.f32.mrf.mxu0 }
  0xe5   : > { %v581_v29 = vpop.f32.mrf.mxu2 }
  0xe7   : > { %v610_v30 = vpop.f32.mrf.mxu3  ;;  %v555_v31 = vpop.f32.mrf.mxu1 }
  0xe9   : > { %v526_v32 = vpop.f32.mrf.mxu0 }
  0xed   : > { %v584_v33 = vpop.f32.mrf.mxu2 }
  0xef   : > { %v613_v34 = vpop.f32.mrf.mxu3  ;;  %v668_v35 = vpop.f32.mrf.mxu1 }
  0xf0   : > { %1678 = vmatpush.xpose.msk.msrb.mxu1 %vm827_vm1, %v668_v35 }
  0xf1   : > { %v642_v36 = vpop.f32.mrf.mxu0 }
  0xf2   : > { %1675 = vmatpush.xpose.msk.msrb.mxu0 %vm827_vm1, %v642_v36 }
  0xf3   : > { %1679 = vmatmul.msk.f32.vlgmr.msrb.gmra.mxu1 %vm827_vm1, %v552_v27 }
  0xf5   : > { %v694_v37 = vpop.f32.mrf.mxu2  ;;  %1676 = vmatmul.msk.f32.vlgmr.msrb.gmra.mxu0 %vm827_vm1, %v523_v28 }
  0xf6   : > { %1681 = vmatpush.xpose.msk.msrb.mxu2 %vm827_vm1, %v694_v37 }
  0xf7   : > { %v720_v38 = vpop.f32.mrf.mxu3  ;;  %v772_v39 = vpop.f32.mrf.mxu1 }
  0xf8   : > { %1684 = vmatpush.xpose.msk.msrb.mxu3 %vm827_vm1, %v720_v38  ;;  %1199 = vmatpush.msra.mxu1 %v772_v39 }
  0xf9   : > { %1682 = vmatmul.msk.f32.vlgmr.msrb.gmra.mxu2 %vm827_vm1, %v581_v29  ;;  %v746_v40 = vpop.f32.mrf.mxu0 }
  0xfa   : > { %1170 = vmatpush.msra.mxu0 %v746_v40 }
  0xfb   : > { %1685 = vmatmul.msk.f32.vlgmr.msrb.gmra.mxu3 %vm827_vm1, %v610_v30  ;;  %1680 = vmatmul.msk.f32.gmra.mxu1 %vm827_vm1, %v555_v31 }
  0xfd   : > { %1677 = vmatmul.msk.f32.gmra.mxu0 %vm827_vm1, %v526_v32  ;;  %v798_v41 = vpop.f32.mrf.mxu2 }
  0xfe   : > { %1228 = vmatpush.msra.mxu2 %v798_v41 }
  0xff   : > { %v824_v42 = vpop.f32.mrf.mxu3 }
 0x100   : > { %1257 = vmatpush.msra.mxu3 %v824_v42 }
 0x101   : > { %1683 = vmatmul.msk.f32.gmra.mxu2 %vm827_vm1, %v584_v33 }
 0x103   : > { %1686 = vmatmul.msk.f32.gmra.mxu3 %vm827_vm1, %v613_v34 }
 0x170   : > { %v886_v43 = vpop.f32.mrf.mxu1 }
 0x171   : > { %v963_v44 = vsel %vm956_vm2, %v886_v43, -inf }
 0x172   : > { %964 = vmax.xlane.f32.xlu2 %v963_v44  ;;  %v854_v48 = vpop.f32.mrf.mxu0 }
 0x173   : > { %v957_v55 = vsel %vm956_vm2, %v854_v48, -inf }
 0x178   : > { %v889_v57 = vpop.f32.mrf.mxu1 }
 0x179   : > { %v966_v58 = vsel %vm956_vm2, %v889_v57, -inf }
 0x17a   : > { %v857_v54 = vpop.f32.mrf.mxu0 }
 0x17b   : > { %v960_v56 = vsel %vm956_vm2, %v857_v54, -inf }
 0x17c   : > { %v918_v45 = vpop.f32.mrf.mxu2 }
 0x17d   : > { %v969_v47 = vsel %vm956_vm2, %v918_v45, -inf }
 0x17e   : > { %v950_v46 = vpop.f32.mrf.mxu3  ;;  %970 = vmax.xlane.f32.xlu0 %v969_v47  ;;  %v490_v47 = vld [vmem:[#allocation11 + $0x28] sm:$0xff] }
 0x17f   : > { %v975_v51 = vsel %vm956_vm2, %v950_v46, -inf  ;;  %1343 = vmatpush.msrb.mxu2 %v490_v47 }
 0x184   : > { %v921_v49 = vpop.f32.mrf.mxu2 }
 0x185   : > { %v972_v52 = vsel %vm956_vm2, %v921_v49, -inf }
 0x186   : > { %v953_v50 = vpop.f32.mrf.mxu3  ;;  %976 = vmax.xlane.f32.xlu0 %v975_v51  ;;  %973 = vmax.xlane.f32.xlu1 %v972_v52 }
 0x187   : > { %v978_v53 = vsel %vm956_vm2, %v953_v50, -inf }
 0x188   : > { %979 = vmax.xlane.f32.xlu2 %v978_v53 }
 0x18e   : > { %958 = vmax.xlane.f32.xlu1 %v957_v55  ;;  %961 = vmax.xlane.f32.xlu0 %v960_v56 }
 0x196   : > { %967 = vmax.xlane.f32.xlu1 %v966_v58 }
 0x1e5   : > { %v965_v60 = vpop.xlane.xlu2 %964 }
 0x1e6   : > { %v983_v5 = vsub.f32 %v886_v43, %v965_v60 }
 0x1e8   : > { %v993_v11 = vmul.f32 1.442695, %v983_v5 }
 0x1f1   : > { %v971_v59 = vpop.xlane.xlu0 %970 }
 0x1f2   : > { %v985_v61 = vsub.f32 %v918_v45, %v971_v59 }
 0x1f4   : > { %v997_v62 = vmul.f32 1.442695, %v985_v61 }
 0x1f6   : > { %1809 = vpow2.f32 %v997_v62 }
 0x1f9   : > { %v977_v63 = vpop.xlane.xlu0 %976  ;;  %v974_v0 = vpop.xlane.xlu1 %973 }
 0x1fa   : > { %v987_v1 = vsub.f32 %v950_v46, %v977_v63  ;;  %v986_v2 = vsub.f32 %v921_v49, %v974_v0 }
 0x1fb   : > { %v980_v3 = vpop.xlane.xlu2 %979 }
 0x1fc   : > { %v2427_v4 = vpop.eup %1809  ;;  %v1001_v6 = vmul.f32 1.442695, %v987_v1  ;;  %v999_v7 = vmul.f32 1.442695, %v986_v2  ;;  %v988_v8 = vsub.f32 %v953_v50, %v980_v3 }
 0x1fd   : > { %v1017_v9 = vsel %vm956_vm2, %v2427_v4, 0.0 }
 0x1fe   : > { %1811 = vpow2.f32 %v1001_v6  ;;  %1018 = vadd.xlane.f32.xlu2 %v1017_v9  ;;  %v1003_v12 = vmul.f32 1.442695, %v988_v8 }
 0x1ff   : > { %1813 = vpow2.f32 %v999_v7 }
 0x200   : > { %1815 = vpow2.f32 %v993_v11 }
 0x201   : > { %v959_v13 = vpop.xlane.xlu1 %958  ;;  %v962_v14 = vpop.xlane.xlu0 %961  ;;  %1817 = vpow2.f32 %v1003_v12 }
 0x202   : > { %v981_v15 = vsub.f32 %v854_v48, %v959_v13  ;;  %v982_v19 = vsub.f32 %v857_v54, %v962_v14  ;;  %v492_v48 = vld [vmem:[#allocation11 + $0x38] sm:$0xff] }
 0x203   : > { %1372 = vmatpush.msrb.mxu3 %v492_v48 }
 0x204   : > { %v2431_v16 = vpop.eup %1811  ;;  %v989_v18 = vmul.f32 1.442695, %v981_v15  ;;  %v991_v23 = vmul.f32 1.442695, %v982_v19 }
 0x205   : > { %v2433_v20 = vpop.eup %1813  ;;  %v1023_v21 = vsel %vm956_vm2, %v2431_v16, 0.0 }
 0x206   : > { %1819 = vpow2.f32 %v989_v18  ;;  %v1020_v22 = vsel %vm956_vm2, %v2433_v20, 0.0  ;;  %1024 = vadd.xlane.f32.xlu0 %v1023_v21  ;;  %v2439_v25 = vpop.eup %1815 }
 0x207   : > { %1021 = vadd.xlane.f32.xlu1 %v1020_v22  ;;  %v2441_v27 = vpop.eup %1817  ;;  %1821 = vpow2.f32 %v991_v23  ;;  %v1011_v31 = vsel %vm956_vm2, %v2439_v25, 0.0 }
 0x208   : > { %v1026_v32 = vsel %vm956_vm2, %v2441_v27, 0.0 }
 0x209   : > { %v968_v24 = vpop.xlane.xlu1 %967 }
 0x20a   : > { %v984_v26 = vsub.f32 %v889_v57, %v968_v24 }
 0x20c   : > { %v2443_v28 = vpop.eup %1819  ;;  %v995_v29 = vmul.f32 1.442695, %v984_v26 }
 0x20d   : > { %v1005_v30 = vsel %vm956_vm2, %v2443_v28, 0.0  ;;  %v2451_v33 = vpop.eup %1821 }
 0x20e   : > { %1823 = vpow2.f32 %v995_v29  ;;  %1006 = vadd.xlane.f32.xlu2 %v1005_v30  ;;  %1012 = vadd.xlane.f32.xlu0 %v1011_v31  ;;  %v1008_v36 = vsel %vm956_vm2, %v2451_v33, 0.0  ;;  %v487_v29 = vld [vmem:[#allocation11 + $0x10] sm:$0xff] }
 0x20f   : > { %1027 = vadd.xlane.f32.xlu1 %v1026_v32 }
 0x214   : > { %v2453_v34 = vpop.eup %1823 }
 0x215   : > { %v1014_v35 = vsel %vm956_vm2, %v2453_v34, 0.0 }
 0x216   : > { %1015 = vadd.xlane.f32.xlu0 %v1014_v35  ;;  %1009 = vadd.xlane.f32.xlu2 %v1008_v36 }
 0x271   : > { %v1019_v37 = vpop.xlane.xlu2 %1018 }
 0x272   : > { %1825 = vrcp.f32 %v1019_v37  ;;  %v1094_v44 = vand.u32 2147483647, %v1019_v37  ;;  %v1096_v45 = vand.u32 2147483648, %v1019_v37  ;;  %vm1090_vm4 = vweird.f32 %v1019_v37 }
 0x274   : > { %vm1095_vm6 = vcmp.eq.f32.partialorder %v1094_v44, 8.507059e+37  ;;  %v1097_v56 = vor.u32 1.1754944e-38, %v1096_v45 }
 0x278   : > { %v1826_v38 = vpop.eup %1825 }
 0x279   : > { %v1086_v39 = vmul.f32 %v1826_v38, %v1019_v37  ;;  %v1025_v40 = vpop.xlane.xlu0 %1024  ;;  %vm1091_vm3 = vweird.f32 %v1826_v38 }
 0x27a   : > { %v2459_v41 = vpop.xlane.xlu1 %1021  ;;  %1827 = vrcp.f32 %v1025_v40  ;;  %vm2462_vm5 = vmor %vm1090_vm4, %vm1091_vm3  ;;  %v1122_v58 = vand.u32 2147483647, %v1025_v40  ;;  %v1124_v62 = vand.u32 2147483648, %v1025_v40  ;;  %vm1118_vm8 = vweird.f32 %v1025_v40 }
 0x27b   : > { %v1087_v42 = vsub.f32 1.0, %v1086_v39  ;;  %1829 = vrcp.f32 %v2459_v41  ;;  %v1110_v60 = vand.u32 2147483648, %v2459_v41  ;;  %v1108_v1 = vand.u32 2147483647, %v2459_v41 }
 0x27c   : > { %vm1104_vm7 = vweird.f32 %v2459_v41  ;;  %vm2485_vm10 = vcmp.eq.f32.partialorder %v1122_v58, 8.507059e+37  ;;  %v1125_v11 = vor.u32 1.1754944e-38, %v1124_v62 }
 0x27d   : > { %v1088_v43 = vmul.f32 %v1826_v38, %v1087_v42  ;;  %v1111_v8 = vor.u32 1.1754944e-38, %v1110_v60  ;;  %vm2499_vm14 = vcmp.eq.f32.partialorder %v1108_v1, 8.507059e+37 }
 0x27f   : > { %v1089_v46 = vadd.f32 %v1826_v38, %v1088_v43 }
 0x280   : > { %v1828_v49 = vpop.eup %1827 }
 0x281   : > { %v2466_v51 = vpop.eup %1829  ;;  %v1093_v52 = vsel %vm2462_vm5, %v1826_v38, %v1089_v46  ;;  %v1114_v53 = vmul.f32 %v1828_v49, %v1025_v40  ;;  %v2470_v54 = vpop.xlane.xlu2 %1006  ;;  %vm1119_vm9 = vweird.f32 %v1828_v49 }
 0x282   : > { %v2472_v55 = vpop.xlane.xlu0 %1012  ;;  %v1100_v57 = vmul.f32 %v2466_v51, %v2459_v41  ;;  %1831 = vrcp.f32 %v2470_v54  ;;  %v2477_v59 = vpop.xlane.xlu1 %1027  ;;  %v1098_v63 = vsel %vm1095_vm6, %v1097_v56, %v1093_v52  ;;  %v1038_v6 = vand.u32 2147483647, %v2470_v54  ;;  %vm2492_vm11 = vmor %vm1118_vm8, %vm1119_vm9 }
 0x283   : > { %v1115_v61 = vsub.f32 1.0, %v1114_v53  ;;  %1833 = vrcp.f32 %v2477_v59  ;;  %v1040_v7 = vand.u32 2147483648, %v2470_v54  ;;  %v1145_v12 = vmul.f32 %v2427_v4, %v1098_v63 }
 0x284   : > { %v1101_v0 = vsub.f32 1.0, %v1100_v57  ;;  %1835 = vrcp.f32 %v2472_v55  ;;  %vm1034_vm12 = vweird.f32 %v2470_v54  ;;  %vm1132_vm13 = vweird.f32 %v2477_v59 }
 0x285   : > { %v1116_v2 = vmul.f32 %v1828_v49, %v1115_v61  ;;  %v1138_v15 = vand.u32 2147483648, %v2477_v59  ;;  %1691 = vmatmul.msk.f32.vlgmr.msra.gmra.mxu2 %vm956_vm2, %v1145_v12  ;;  %vm1105_vm15 = vweird.f32 %v2466_v51  ;;  %vm2513_vm3 = vcmp.eq.f32.partialorder %v1038_v6, 8.507059e+37 }
 0x286   : > { %v1102_v3 = vmul.f32 %v2466_v51, %v1101_v0  ;;  %v1041_v30 = vor.u32 1.1754944e-38, %v1040_v7  ;;  %v1066_v37 = vand.u32 2147483647, %v2472_v55  ;;  %v1068_v39 = vand.u32 2147483648, %v2472_v55  ;;  %vm1106_vm4 = vmor %vm1104_vm7, %vm1105_vm15 }
 0x287   : > { %v1117_v9 = vadd.f32 %v1828_v49, %v1116_v2  ;;  %v1136_v40 = vand.u32 2147483647, %v2477_v59  ;;  %v1139_v52 = vor.u32 1.1754944e-38, %v1138_v15  ;;  %vm1062_vm9 = vweird.f32 %v2472_v55 }
 0x288   : > { %v1832_v13 = vpop.eup %1831  ;;  %v1103_v24 = vadd.f32 %v2466_v51, %v1102_v3  ;;  %v1069_v57 = vor.u32 1.1754944e-38, %v1068_v39 }
 0x289   : > { %v1834_v19 = vpop.eup %1833  ;;  %v1121_v21 = vsel %vm2492_vm11, %v1828_v49, %v1117_v9  ;;  %v1030_v4 = vmul.f32 %v1832_v13, %v2470_v54  ;;  %v2507_v22 = vpop.xlane.xlu2 %1009  ;;  %vm1035_vm5 = vweird.f32 %v1832_v13 }
 0x28a   : > { %v2509_v23 = vpop.xlane.xlu0 %1015  ;;  %v1836_v26 = vpop.eup %1835  ;;  %v1128_v31 = vmul.f32 %v1834_v19, %v2477_v59  ;;  %1837 = vrcp.f32 %v2507_v22  ;;  %v1126_v32 = vsel %vm2485_vm10, %v1125_v11, %v1121_v21  ;;  %v1107_v44 = vsel %vm1106_vm4, %v2466_v51, %v1103_v24  ;;  %vm1036_vm7 = vmor %vm1034_vm12, %vm1035_vm5  ;;  %v491_v24 = vld [vmem:[#allocation11 + $0x30] sm:$0xff] }
 0x28b   : > { %v1031_v35 = vsub.f32 1.0, %v1030_v4  ;;  %v1058_v36 = vmul.f32 %v1836_v26, %v2472_v55  ;;  %1839 = vrcp.f32 %v2509_v23  ;;  %vm1063_vm6 = vweird.f32 %v1836_v26  ;;  %v486_v4 = vld [vmem:[#allocation11 + $0x8] sm:$0xff]  ;;  %1373 = vmatpush.msrb.mxu3 %v491_v24 }
 0x28c   : > { %v1129_v38 = vsub.f32 1.0, %v1128_v31  ;;  %v1112_v46 = vsel %vm2499_vm14, %v1111_v8, %v1107_v44  ;;  %v1147_v47 = vmul.f32 %v2431_v16, %v1126_v32  ;;  %vm1133_vm8 = vweird.f32 %v1834_v19  ;;  %vm1064_vm12 = vmor %vm1062_vm9, %vm1063_vm6  ;;  %1285 = vmatpush.msrb.mxu0 %v486_v4 }
 0x28d   : > { %v1032_v42 = vmul.f32 %v1832_v13, %v1031_v35  ;;  %v1059_v43 = vsub.f32 1.0, %v1058_v36  ;;  %v1146_v50 = vmul.f32 %v2433_v20, %v1112_v46  ;;  %vm2536_vm10 = vcmp.eq.f32.partialorder %v1066_v37, 8.507059e+37  ;;  %vm1134_vm11 = vmor %vm1132_vm13, %vm1133_vm8 }
 0x28e   : > { %v1130_v45 = vmul.f32 %v1834_v19, %v1129_v38  ;;  %1693 = vmatmul.msk.f32.vlgmr.msra.gmra.mxu3 %vm956_vm2, %v1147_v47  ;;  %v1054_v58 = vand.u32 2147483648, %v2507_v22  ;;  %vm1137_vm14 = vcmp.eq.f32.partialorder %v1136_v40, 8.507059e+37  ;;  %v1052_v2 = vand.u32 2147483647, %v2507_v22 }
 0x28f   : > { %v1033_v48 = vadd.f32 %v1832_v13, %v1032_v42  ;;  %v1060_v49 = vmul.f32 %v1836_v26, %v1059_v43  ;;  %1692 = vmatmul.msk.f32.gmra.mxu2 %vm956_vm2, %v1146_v50  ;;  %vm1048_vm15 = vweird.f32 %v2507_v22  ;;  %v1082_v8 = vand.u32 2147483648, %v2509_v23 }
 0x290   : > { %v1838_v41 = vpop.eup %1837  ;;  %v1131_v53 = vadd.f32 %v1834_v19, %v1130_v45  ;;  %v1080_v11 = vand.u32 2147483647, %v2509_v23  ;;  %v1055_v12 = vor.u32 1.1754944e-38, %v1054_v58  ;;  %vm1076_vm5 = vweird.f32 %v2509_v23 }
 0x291   : > { %v1037_v16 = vsel %vm1036_vm7, %v1832_v13, %v1033_v48  ;;  %v1061_v56 = vadd.f32 %v1836_v26, %v1060_v49  ;;  %v1044_v20 = vmul.f32 %v1838_v41, %v2507_v22  ;;  %v1840_v54 = vpop.eup %1839  ;;  %vm1049_vm13 = vweird.f32 %v1838_v41  ;;  %v488_v22 = vld [vmem:[#allocation11 + $0x18] sm:$0xff]  ;;  %v1806_v48 = vld [vmem:[%s2642_s6] ss:$0 sm:$0xff] }
 0x292   : > { %v1042_v55 = vsel %vm2513_vm3, %v1041_v30, %v1037_v16  ;;  %v1135_v60 = vsel %vm1134_vm11, %v1834_v19, %v1131_v53  ;;  %v1072_v63 = vmul.f32 %v1840_v54, %v2509_v23  ;;  %vm1077_vm3 = vweird.f32 %v1840_v54  ;;  %vm1050_vm4 = vmor %vm1048_vm15, %vm1049_vm13  ;;  %v489_v23 = vld [vmem:[#allocation11 + $0x20] sm:$0xff]  ;;  %1314 = vmatpush.msrb.mxu1 %v488_v22 }
 0x293   : > { %v1065_v61 = vsel %vm1064_vm12, %v1836_v26, %v1061_v56  ;;  %v1045_v62 = vsub.f32 1.0, %v1044_v20  ;;  %v1141_v0 = vmul.f32 %v2443_v28, %v1042_v55  ;;  %v1140_v1 = vsel %vm1137_vm14, %v1139_v52, %v1135_v60  ;;  %vm1078_vm8 = vmor %vm1076_vm5, %vm1077_vm3  ;;  %1344 = vmatpush.msrb.mxu2 %v489_v23  ;;  %v485_v26 = vld [vmem:[#allocation11] sm:$0xff] }
 0x294   : > { %v1070_v59 = vsel %vm2536_vm10, %v1069_v57, %v1065_v61  ;;  %v1073_v5 = vsub.f32 1.0, %v1072_v63  ;;  %v1148_v7 = vmul.f32 %v2441_v27, %v1140_v1  ;;  %vm1053_vm6 = vcmp.eq.f32.partialorder %v1052_v2, 8.507059e+37  ;;  %1286 = vmatpush.msrb.mxu0 %v485_v26  ;;  %1315 = vmatpush.msrb.mxu1 %v487_v29 }
 0x295   : > { %v1046_v3 = vmul.f32 %v1838_v41, %v1045_v62  ;;  %1687 = vmatmul.msk.f32.vlgmr.msra.gmra.mxu0 %vm956_vm2, %v1141_v0  ;;  %v1143_v6 = vmul.f32 %v2439_v25, %v1070_v59  ;;  %v1083_v13 = vor.u32 1.1754944e-38, %v1082_v8  ;;  %vm1081_vm7 = vcmp.eq.f32.partialorder %v1080_v11, 8.507059e+37 }
 0x296   : > { %v1074_v28 = vmul.f32 %v1840_v54, %v1073_v5  ;;  %1694 = vmatmul.msk.f32.gmra.mxu3 %vm956_vm2, %v1148_v7 }
 0x297   : > { %1689 = vmatmul.msk.f32.vlgmr.msra.gmra.mxu1 %vm956_vm2, %v1143_v6  ;;  %v1047_v9 = vadd.f32 %v1838_v41, %v1046_v3 }
 0x298   : > { %v1075_v27 = vadd.f32 %v1840_v54, %v1074_v28 }
 0x299   : > { %v1051_v25 = vsel %vm1050_vm4, %v1838_v41, %v1047_v9 }
 0x29a   : > { %v1056_v14 = vsel %vm1053_vm6, %v1055_v12, %v1051_v25  ;;  %v1079_v18 = vsel %vm1078_vm8, %v1840_v54, %v1075_v27 }
 0x29b   : > { %v1142_v15 = vmul.f32 %v2451_v33, %v1056_v14  ;;  %v1084_v19 = vsel %vm1081_vm7, %v1083_v13, %v1079_v18 }
 0x29c   : > { %v1144_v21 = vmul.f32 %v2453_v34, %v1084_v19 }
 0x29d   : > { %1688 = vmatmul.msk.f32.gmra.mxu0 %vm956_vm2, %v1142_v15 }
 0x29f   : > { %1690 = vmatmul.msk.f32.gmra.mxu1 %vm956_vm2, %v1144_v21 }
 0x308   : > { %v1230_v33 = vpop.f32.mrf.mxu2 }
 0x309   : > { %1699 = vmatmul.msk.f32.vlgmr.msrb.gmra.mxu2 %vm827_vm1, %v1230_v33  ;;  %v1807_v33 = vld [vmem:[%s2643_s7] ss:$0 sm:$0xff] }
 0x311   : > { %v1259_v31 = vpop.f32.mrf.mxu3 }
 0x312   : > { %v1172_v30 = vpop.f32.mrf.mxu0  ;;  %v1233_v34 = vpop.f32.mrf.mxu2  ;;  %1701 = vmatmul.msk.f32.vlgmr.msrb.gmra.mxu3 %vm827_vm1, %v1259_v31 }
 0x313   : > { %1695 = vmatmul.msk.f32.vlgmr.msrb.gmra.mxu0 %vm827_vm1, %v1172_v30  ;;  %1700 = vmatmul.msk.f32.gmra.mxu2 %vm827_vm1, %v1233_v34  ;;  %v1808_v34 = vld [vmem:[%s2644_s8] ss:$0 sm:$0xff] }
 0x314   : > { %v1201_v32 = vpop.f32.mrf.mxu1 }
 0x315   : > { %1697 = vmatmul.msk.f32.vlgmr.msrb.gmra.mxu1 %vm827_vm1, %v1201_v32 }
 0x319   : > { %v1262_v36 = vpop.f32.mrf.mxu3 }
 0x31a   : > { %v1175_v35 = vpop.f32.mrf.mxu0  ;;  %1702 = vmatmul.msk.f32.gmra.mxu3 %vm827_vm1, %v1262_v36 }
 0x31b   : > { %1696 = vmatmul.msk.f32.gmra.mxu0 %vm827_vm1, %v1175_v35 }
 0x31c   : > { %v1204_v37 = vpop.f32.mrf.mxu1 }
 0x31d   : > { %1698 = vmatmul.msk.f32.gmra.mxu1 %vm827_vm1, %v1204_v37 }
 0x38c   : > { %v1346_v38 = vpop.f32.mrf.mxu2 }
 0x38d   : > { %v1384_v45 = vsel %vm493_vm0, %v1346_v38, 0.0 }
 0x390   : > { %v1288_v39 = vpop.f32.mrf.mxu0 }
 0x391   : > { %v1381_v40 = vsel %vm493_vm0, %v1288_v39, 0.0 }
 0x392   : > { %v1317_v42 = vpop.f32.mrf.mxu1 }
 0x393   : > { %v1382_v43 = vsel %vm493_vm0, %v1317_v42, 0.0 }
 0x394   : > { %v1383_v44 = vadd.f32 %v1382_v43, %v1381_v40 }
 0x395   : > { %v1375_v47 = vpop.f32.mrf.mxu3 }
 0x396   : > { %v1385_v46 = vadd.f32 %v1384_v45, %v1383_v44  ;;  %v1386_v49 = vsel %vm493_vm0, %v1375_v47, 0.0  ;;  %v1349_v51 = vpop.f32.mrf.mxu2 }
 0x397   : > { %v1391_v20 = vsel %vm493_vm0, %v1349_v51, 0.0 }
 0x398   : > { %v1291_v50 = vpop.f32.mrf.mxu0  ;;  %v1387_v41 = vadd.f32 %v1386_v49, %v1385_v46 }
 0x399   : > { %v1388_v52 = vsel %vm493_vm0, %v1291_v50, 0.0 }
 0x39a   : > { %v1320_v53 = vpop.f32.mrf.mxu1  ;;  %v1399_v16 = vadd.f32 %v1806_v48, %v1387_v41 }
 0x39b   : > { %v1389_v56 = vsel %vm493_vm0, %v1320_v53, 0.0 }
 0x39c   : > { %v1390_v57 = vadd.f32 %v1389_v56, %v1388_v52  ;;  %v1401_v54 = vsel %vm493_vm0, %v1399_v16, 0.0  ;;  %v1407_v55 = vmul.f32 %v1399_v16, %v1399_v16 }
 0x39d   : > { %1402 = vadd.xlane.f32.xlu1 %v1401_v54  ;;  %v1378_v60 = vpop.f32.mrf.mxu3 }
 0x39e   : > { %v1392_v58 = vadd.f32 %v1391_v20, %v1390_v57  ;;  %v1409_v61 = vsel %vm493_vm0, %v1407_v55, 0.0  ;;  %v1393_v62 = vsel %vm493_vm0, %v1378_v60, 0.0 }
 0x39f   : > { %1410 = vadd.xlane.f32.xlu0 %v1409_v61 }
 0x3a0   : > { %v1394_v63 = vadd.f32 %v1393_v62, %v1392_v58 }
 0x3a2   : > { %v1400_v0 = vadd.f32 %v1806_v48, %v1394_v63 }
 0x3a4   : > { %v1404_v59 = vsel %vm493_vm0, %v1400_v0, 0.0  ;;  %v1408_v1 = vmul.f32 %v1400_v0, %v1400_v0 }
 0x3a5   : > { %1405 = vadd.xlane.f32.xlu2 %v1404_v59 }
 0x3a6   : > { %v1412_v2 = vsel %vm493_vm0, %v1408_v1, 0.0 }
 0x3a7   : > { %1413 = vadd.xlane.f32.xlu1 %v1412_v2 }
 0x410   : > { %v1403_v3 = vpop.xlane.xlu1 %1402 }
 0x411   : > { %v1415_v5 = vmul.f32 0.015625, %v1403_v3 }
 0x412   : > { %v1411_v6 = vpop.xlane.xlu0 %1410 }
 0x413   : > { %v1419_v7 = vmul.f32 %v1415_v5, %v1415_v5  ;;  %v1417_v8 = vmul.f32 0.015625, %v1411_v6  ;;  %v1423_v29 = vsub.f32 %v1399_v16, %v1415_v5 }
 0x415   : > { %v1421_v28 = vsub.f32 %v1417_v8, %v1419_v7 }
 0x417   : > { %v1425_v9 = vadd.f32 1e-05, %v1421_v28 }
 0x418   : > { %v1406_v11 = vpop.xlane.xlu2 %1405 }
 0x419   : > { %1841 = vrsqrt.f32 %v1425_v9  ;;  %v1416_v12 = vmul.f32 0.015625, %v1406_v11  ;;  %vm1433_vm2 = vweird.f32 %v1425_v9 }
 0x41a   : > { %v1414_v25 = vpop.xlane.xlu1 %1413 }
 0x41b   : > { %v1420_v27 = vmul.f32 %v1416_v12, %v1416_v12  ;;  %v1418_v13 = vmul.f32 0.015625, %v1414_v25  ;;  %v1424_v42 = vsub.f32 %v1400_v0, %v1416_v12 }
 0x41d   : > { %v1422_v14 = vsub.f32 %v1418_v13, %v1420_v27 }
 0x41f   : > { %v1842_v15 = vpop.eup %1841  ;;  %v1426_v18 = vadd.f32 1e-05, %v1422_v14 }
 0x420   : > { %v1428_v19 = vmul.f32 %v1842_v15, %v1425_v9  ;;  %vm1434_vm1 = vweird.f32 %v1842_v15 }
 0x421   : > { %1843 = vrsqrt.f32 %v1426_v18  ;;  %vm1435_vm9 = vmor %vm1433_vm2, %vm1434_vm1  ;;  %vm1443_vm11 = vweird.f32 %v1426_v18 }
 0x422   : > { %v1429_v21 = vmul.f32 %v1842_v15, %v1428_v19 }
 0x424   : > { %v1430_v4 = vmul.f32 0.5, %v1429_v21 }
 0x426   : > { %v1431_v22 = vsub.f32 1.5, %v1430_v4 }
 0x427   : > { %v1844_v23 = vpop.eup %1843 }
 0x428   : > { %v1432_v24 = vmul.f32 %v1842_v15, %v1431_v22  ;;  %v1438_v26 = vmul.f32 %v1844_v23, %v1426_v18  ;;  %vm1444_vm10 = vweird.f32 %v1844_v23 }
 0x429   : > { %vm1445_vm12 = vmor %vm1443_vm11, %vm1444_vm10 }
 0x42a   : > { %v1436_v30 = vsel %vm1435_vm9, %v1842_v15, %v1432_v24  ;;  %v1439_v31 = vmul.f32 %v1844_v23, %v1438_v26 }
 0x42b   : > { %v1447_v32 = vmul.f32 %v1436_v30, %v1423_v29 }
 0x42c   : > { %v1440_v35 = vmul.f32 0.5, %v1439_v31 }
 0x42d   : > { %v1453_v36 = vmul.f32 %v1807_v33, %v1447_v32 }
 0x42e   : > { %v1441_v37 = vsub.f32 1.5, %v1440_v35 }
 0x42f   : > { %v1459_v38 = vadd.f32 %v1808_v34, %v1453_v36 }
 0x430   : > { %v1442_v39 = vmul.f32 %v1844_v23, %v1441_v37 }
 0x431   : > { %v1461_v40 = vadd.f32 %v1459_v38, %v2359_v10 }
 0x432   : > { %v1446_v43 = vsel %vm1445_vm12, %v1844_v23, %v1442_v39 }
 0x433   : > { %v1448_v44 = vmul.f32 %v1446_v43, %v1424_v42  ;;  %1463 = vst.msk [vmem:[%s457_s14] sm:$0xff] %vm493_vm0, %v1461_v40 }
 0x435   : > { %v1454_v45 = vmul.f32 %v1807_v33, %v1448_v44 }
 0x437   : > { %v1460_v46 = vadd.f32 %v1808_v34, %v1454_v45 }
 0x439   : > { %v1462_v10 = vadd.f32 %v1460_v46, %v2378_v17 }
 0x43b   : > { %1464 = vst.msk [vmem:[%s457_s14 + $0x8] sm:$0xff] %vm493_vm0, %v1462_v10 }
 0x43c   : > { %2052 = shalt.err (!%p2049_p9)
}
 0x43d   : > { %s2115_s2 = smov 128   ;;  %s2116_s25 = smov 8  }
 0x43e   : > { %1730 = dma.vmem_to_hbm [thread:$0]  (%p2263_p3), %s1479_s13, 256, %s1481_s11, %s1466_s16, %s2115_s2, %s2115_s2, %s2116_s25  }
 0x43f PF: > { %s1495_s5 = sand.u32 1, %s2095_s30   ;;  %p2685_p12 = scmp.ge.s32.totalorder %s2107_s12, 2 }
 0x440   : > { %s1496_s23 = scalar_lea.sflag [#allocation4], %s1495_s5 }
 0x441   : > { %p1753_p13 = pnand %p2685_p12, %p2202_p6 }
 0x443   : > { %p1754_p0 = pneg %p1753_p13 }
 0x445   : > { %2090 = dma.done.wait (%p1754_p0), %s1496_s23, 256  }
 0x446   : > { %2092 = vsyncadd (%p1754_p0), %s1496_s23, 4294967040  ;;  %s2686_s12 = sld [smem:[#allocation22_spill]]  ;;  %s2689_s30 = smov %s2099_s10 }
 0x447   : > { %s2687_s29 = sld [smem:[#allocation20_spill]] }
 0x448   : > { %s2688_s11 = sld [smem:[#allocation23_spill]] }
 0x44c   : > { %p27_p5 = scmp.ge.s32.totalorder %s2686_s12, 4  }
 0x44d   : > { %s2690_s10 = smov %s2687_s29 }
 0x44e   :  { %29 = sbr.rel (!%p27_p5) target bundleno = 14 (0xe), region = 130 }
 0x453   :  { %1502 = vsyncpa [#allocation3], 1 }
 0x454   :  { %1504 = vsyncpa [#allocation3 + $0x1], 1 }
 0x455   :  { %1505 = vsyncpa [#allocation6], 1 }
 0x456   :  { %1507 = vsyncpa [#allocation6 + $0x1], 1 }
 0x457   :  { %1508 = vsyncpa [#allocation9], 1 }
 0x458   :  { %1509 = vsyncpa [#allocation12], 1 }
 0x459   :  { %1510 = vsyncpa [#allocation4], 1 }
 0x45a   :  { %1512 = vsyncpa [#allocation4 + $0x1], 1 }

</bundles_post_ra>
